<compile_context>
chip_gen: v7x
topology: tpu7x:2x2x1
jax: 0.10.0
libtpu: 0.0.40
codegen_flags: <defaults>
</compile_context>

<pallas_src>
import math
from functools import partial

import jax
import jax.numpy as jnp
from jax import lax
from jax.experimental import pallas as pl
from jax.experimental.pallas import tpu as pltpu


def _round_up(x, m):
    return ((x + m - 1) // m) * m


# ----------------------------- Pallas kernels -----------------------------
def _agg_kernel(a_ref, xw_ref, b_ref, o_ref, acc_ref, *, apply_relu):
    # out[i] = sum_k A[i, k] @ XW[k]   (+ bias, optional ReLU)  — accumulator pattern
    k = pl.program_id(1)

    @pl.when(k == 0)
    def _():
        acc_ref[...] = jnp.zeros_like(acc_ref)

    acc_ref[...] += jnp.dot(a_ref[...], xw_ref[...],
                            preferred_element_type=jnp.float32)

    @pl.when(k == pl.num_programs(1) - 1)
    def _():
        out = acc_ref[...] + b_ref[...]
        if apply_relu:
            out = jnp.maximum(out, 0.0)
        o_ref[...] = out.astype(o_ref.dtype)


def _agg_residual_kernel(a_ref, xw_ref, b_ref, ori_ref, o_ref, acc_ref, *,
                         residual, apply_relu):
    k = pl.program_id(1)

    @pl.when(k == 0)
    def _():
        acc_ref[...] = jnp.zeros_like(acc_ref)

    acc_ref[...] += jnp.dot(a_ref[...], xw_ref[...],
                            preferred_element_type=jnp.float32)

    @pl.when(k == pl.num_programs(1) - 1)
    def _():
        out = acc_ref[...] + b_ref[...] + residual * ori_ref[...]
        if apply_relu:
            out = jnp.maximum(out, 0.0)
        o_ref[...] = out.astype(o_ref.dtype)


# --------------------------- pallas_call wrapper ---------------------------
def _fused_aggregate(a_pad, xw_pad, b_pad, ori_pad, *, residual, apply_relu,
                     tm, tk):
    """out = A_pad @ XW_pad + bias (+ residual*ori) (+ ReLU), tiled (tm, tk)."""
    n_pad = a_pad.shape[0]
    f_pad = xw_pad.shape[1]
    grid = (n_pad // tm, n_pad // tk)

    in_specs = [
        pl.BlockSpec((tm, tk), lambda i, k: (i, k)),      # A row/col tile (bf16)
        pl.BlockSpec((tk, f_pad), lambda i, k: (k, 0)),   # XW k-tile (bf16)
        pl.BlockSpec((1, f_pad), lambda i, k: (0, 0)),    # bias (grid-invariant)
    ]
    inputs = [a_pad, xw_pad, b_pad]

    if ori_pad is not None:
        in_specs.append(pl.BlockSpec((tm, f_pad), lambda i, k: (i, 0)))
        inputs.append(ori_pad)
        kernel = partial(_agg_residual_kernel, residual=float(residual),
                         apply_relu=bool(apply_relu))
    else:
        kernel = partial(_agg_kernel, apply_relu=bool(apply_relu))

    return pl.pallas_call(
        kernel,
        out_shape=jax.ShapeDtypeStruct((n_pad, f_pad), jnp.float32),
        grid_spec=pltpu.PrefetchScalarGridSpec(
            num_scalar_prefetch=0,
            grid=grid,
            in_specs=in_specs,
            out_specs=pl.BlockSpec((tm, f_pad), lambda i, k: (i, 0)),
            scratch_shapes=[pltpu.VMEM((tm, f_pad), jnp.float32)],
        ),
        compiler_params=pltpu.CompilerParams(
            dimension_semantics=("parallel", "arbitrary"),
            vmem_limit_bytes=32 * 1024 * 1024,
        ),
    )(*inputs)


def _graphconv_layer(a_pad, n_nodes, h, w, b, *, ori=None, residual=0.0,
                     apply_relu=False, tm=256, tk=256):
    """One GraphConv layer on a pre-padded bf16 adjacency."""
    n_pad = a_pad.shape[0]
    f_out = w.shape[1]
    f_pad = _round_up(f_out, 128)

    # Feature transform hoisted out of the Pallas kernel (small GEMM); the
    # aggregation kernel then runs one big MXU-shaped A @ XW instead of a tiny
    # (tm, F_in) x (F_in, F_out) matmul per row tile.
    xw = jnp.dot(h.astype(jnp.float32), w.astype(jnp.float32),
                 preferred_element_type=jnp.float32,
                 precision=lax.Precision.HIGHEST)

    xw_pad = jnp.zeros((n_pad, f_pad), jnp.bfloat16)
    xw_pad = xw_pad.at[:n_nodes, :f_out].set(xw.astype(jnp.bfloat16))

    b_pad = jnp.zeros((1, f_pad), jnp.float32)
    b_pad = b_pad.at[0, :f_out].set(b.astype(jnp.float32))

    ori_pad = None
    if ori is not None and residual != 0.0:
        assert ori.shape[1] == f_out, "residual connection requires in_feats == h_feats"
        ori_pad = jnp.zeros((n_pad, f_pad), jnp.float32)
        ori_pad = ori_pad.at[:n_nodes, :f_out].set(ori.astype(jnp.float32))

    out = _fused_aggregate(a_pad, xw_pad, b_pad, ori_pad,
                           residual=residual, apply_relu=apply_relu,
                           tm=tm, tk=tk)
    return out[:n_nodes, :f_out]


# ------------------------------ GCN forward ------------------------------
def gcn_forward(a_norm, in_feat, params, *, prop_step=2, residual=0.0,
                relu=False, tm=256, tk=256):
    # TODO(synk): norm=True branch (LayerNorm + Dropout) and drop_edge (random
    # train-time edge removal) are not implemented (module defaults are off).
    n = a_norm.shape[0]
    block = (tm * tk) // math.gcd(tm, tk)
    n_pad = _round_up(n, block)

    # Pad once and cast the dominant O(N^2) operand to bf16 (halves HBM traffic,
    # full-rate MXU).  Accumulation inside the kernel stays f32.
    a_pad = jnp.zeros((n_pad, n_pad), jnp.bfloat16)
    a_pad = a_pad.at[:n, :n].set(a_norm.astype(jnp.bfloat16))

    ori = in_feat
    h = in_feat
    for step in range(prop_step):
        w = params["w1"] if step == 0 else params["w2"]
        b = params["b1"] if step == 0 else params["b2"]
        # ReLU is applied to h *before* every conv2 call in the reference module,
        # i.e. fused into the epilogue of every layer except the last.
        apply_relu = bool(relu) and (step < prop_step - 1)
        h = _graphconv_layer(a_pad, n, h, w, b,
                             ori=ori, residual=residual,
                             apply_relu=apply_relu, tm=tm, tk=tk)
    return h


def build_normalized_adjacency(src, dst, n_nodes):
    """Dense DGL-style 'both' normalization with self-loops:
       A_hat[i,j] = edge(j->i) * deg_in(i)^{-1/2} * deg_out(j)^{-1/2}."""
    adj = jnp.zeros((n_nodes, n_nodes), jnp.float32)
    adj = adj.at[dst, src].add(1.0)                   # rows = dst, cols = src
    adj = adj + jnp.eye(n_nodes, dtype=jnp.float32)   # dgl.add_self_loop
    deg_in = adj.sum(axis=1)
    deg_out = adj.sum(axis=0)
    d_in = jnp.where(deg_in > 0, 1.0 / jnp.sqrt(deg_in), 0.0)
    d_out = jnp.where(deg_out > 0, 1.0 / jnp.sqrt(deg_out), 0.0)
    return adj * d_in[:, None] * d_out[None, :]


if __name__ == "__main__":
    key = jax.random.PRNGKey(0)
    n_nodes, in_feats, h_feats, n_edges = 512, 128, 128, 4096

    k_src, k_dst, k_x, k_w1, k_w2 = jax.random.split(key, 5)
    src = jax.random.randint(k_src, (n_edges,), 0, n_nodes)
    dst = jax.random.randint(k_dst, (n_edges,), 0, n_nodes)
    a_norm = build_normalized_adjacency(src, dst, n_nodes)

    node_features = jax.random.normal(k_x, (n_nodes, in_feats), jnp.float32)

    # Deterministic parameter init (GraphConv: weight (in, out), bias (out,))
    params = {
        "w1": jax.random.normal(k_w1, (in_feats, h_feats), jnp.float32)
              * (1.0 / jnp.sqrt(in_feats)),
        "b1": jnp.zeros((h_feats,), jnp.float32),
        "w2": jax.random.normal(k_w2, (h_feats, h_feats), jnp.float32)
              * (1.0 / jnp.sqrt(h_feats)),
        "b2": jnp.zeros((h_feats,), jnp.float32),
    }

    fwd = jax.jit(partial(gcn_forward, prop_step=2, residual=0.0, relu=False,
                          tm=256, tk=256))
    out = fwd(a_norm, node_features, params)
    jax.block_until_ready(out)

    # Reference with matching bf16 operand rounding (f32 accumulation).
    def ref_layer(a, x, w, b):
        xw = jnp.dot(x, w, preferred_element_type=jnp.float32,
                     precision=lax.Precision.HIGHEST)
        a32 = a.astype(jnp.bfloat16).astype(jnp.float32)
        xw32 = xw.astype(jnp.bfloat16).astype(jnp.float32)
        return jnp.dot(a32, xw32, preferred_element_type=jnp.float32,
                       precision=lax.Precision.HIGHEST) + b

    ref = ref_layer(a_norm, node_features, params["w1"], params["b1"])
    ref = ref_layer(a_norm, ref, params["w2"], params["b2"])

    assert out.shape == (n_nodes, h_feats)
    assert jnp.allclose(out, ref, atol=3e-3, rtol=3e-3), \
        float(jnp.max(jnp.abs(out - ref)))

    print("KERNEL_OK")
</pallas_src>

<mosaic_0001>
module attributes {stable_mosaic.version = 11 : i64} {
  func.func @_agg_kernel(%arg0: i32, %arg1: i32, %arg2: memref<256x256xbf16, #tpu.memory_space<vmem>>, %arg3: memref<256x128xbf16, #tpu.memory_space<vmem>>, %arg4: memref<1x128xf32, #tpu.memory_space<vmem>>, %arg5: memref<256x128xf32, #tpu.memory_space<vmem>>, %arg6: memref<256x128xf32, #tpu.memory_space<vmem>>) attributes {dimension_semantics = [#tpu.dimension_semantics<parallel>, #tpu.dimension_semantics<arbitrary>], iteration_bounds = array<i64: 2, 2>, scalar_prefetch = 0 : i64, scratch_operands = 1 : i64, tpu.core_type = #tpu.core_type<tc>, window_params = [{transform_indices = @transform_0, window_bounds = array<i64: 256, 256>}, {transform_indices = @transform_1, window_bounds = array<i64: 256, 128>}, {pipeline_mode = #tpu.pipeline_mode<synchronous>, transform_indices = @transform_2, window_bounds = array<i64: 1, 128>}, {transform_indices = @transform_3, window_bounds = array<i64: 256, 128>}]} {
    %c0_i32 = arith.constant 0 : i32
    %0 = arith.cmpi eq, %arg1, %c0_i32 : i32
    %1 = arith.extui %0 : i1 to i32
    %c0_i32_0 = arith.constant 0 : i32
    %2 = arith.cmpi ne, %1, %c0_i32_0 : i32
    scf.if %2 {
      %cst_9 = arith.constant 0.000000e+00 : f32
      %12 = vector.broadcast %cst_9 : f32 to vector<256x128xf32>
      %c0_10 = arith.constant 0 : index
      %c0_11 = arith.constant 0 : index
      %13 = vector.load %arg6[%c0_10, %c0_11] : memref<256x128xf32, #tpu.memory_space<vmem>>, vector<256x128xf32>
      tpu.vector_store %arg6[%c0_10, %c0_11], %12 {strides = array<i32>} : memref<256x128xf32, #tpu.memory_space<vmem>>, vector<256x128xf32>,
    } else {
    }
    %c0 = arith.constant 0 : index
    %c0_1 = arith.constant 0 : index
    %3 = vector.load %arg6[%c0, %c0_1] : memref<256x128xf32, #tpu.memory_space<vmem>>, vector<256x128xf32>
    %c0_2 = arith.constant 0 : index
    %c0_3 = arith.constant 0 : index
    %4 = vector.load %arg2[%c0_2, %c0_3] : memref<256x256xbf16, #tpu.memory_space<vmem>>, vector<256x256xbf16>
    %c0_4 = arith.constant 0 : index
    %c0_5 = arith.constant 0 : index
    %5 = vector.load %arg3[%c0_4, %c0_5] : memref<256x128xbf16, #tpu.memory_space<vmem>>, vector<256x128xbf16>
    %cst = arith.constant dense<0.000000e+00> : vector<256x128xf32>
    %6 = tpu.matmul %4, %5, %cst {dimension_numbers = #tpu.dot_dimension_numbers<[1], [0], [0], [1], [0, 0, 1, 1], [], []>} : vector<256x256xbf16>, vector<256x128xbf16>, vector<256x128xf32> -> vector<256x128xf32>
    %7 = arith.addf %3, %6 : vector<256x128xf32>
    %c0_6 = arith.constant 0 : index
    %c0_7 = arith.constant 0 : index
    %8 = vector.load %arg6[%c0_6, %c0_7] : memref<256x128xf32, #tpu.memory_space<vmem>>, vector<256x128xf32>
    tpu.vector_store %arg6[%c0_6, %c0_7], %7 {strides = array<i32>} : memref<256x128xf32, #tpu.memory_space<vmem>>, vector<256x128xf32>,
    %c1_i32 = arith.constant 1 : i32
    %9 = arith.cmpi eq, %arg1, %c1_i32 : i32
    %10 = arith.extui %9 : i1 to i32
    %c0_i32_8 = arith.constant 0 : i32
    %11 = arith.cmpi ne, %10, %c0_i32_8 : i32
    scf.if %11 {
      %c0_9 = arith.constant 0 : index
      %c0_10 = arith.constant 0 : index
      %12 = vector.load %arg6[%c0_9, %c0_10] : memref<256x128xf32, #tpu.memory_space<vmem>>, vector<256x128xf32>
      %c0_11 = arith.constant 0 : index
      %c0_12 = arith.constant 0 : index
      %13 = vector.load %arg4[%c0_11, %c0_12] : memref<1x128xf32, #tpu.memory_space<vmem>>, vector<1x128xf32>
      %14 = vector.broadcast %13 : vector<1x128xf32> to vector<256x128xf32>
      %15 = arith.addf %12, %14 : vector<256x128xf32>
      %c0_13 = arith.constant 0 : index
      %c0_14 = arith.constant 0 : index
      %16 = vector.load %arg5[%c0_13, %c0_14] : memref<256x128xf32, #tpu.memory_space<vmem>>, vector<256x128xf32>
      tpu.vector_store %arg5[%c0_13, %c0_14], %15 {strides = array<i32>} : memref<256x128xf32, #tpu.memory_space<vmem>>, vector<256x128xf32>,
    } else {
    }
    return
  }
  func.func @transform_0(%arg0: i32, %arg1: i32) -> (i32, i32) {
    %c0_i32 = arith.constant 0 : i32
    return %arg0, %arg1 : i32, i32
  }
  func.func @transform_1(%arg0: i32, %arg1: i32) -> (i32, i32) {
    %c0_i32 = arith.constant 0 : i32
    %c0_i32_0 = arith.constant 0 : i32
    return %arg1, %c0_i32 : i32, i32
  }
  func.func @transform_2(%arg0: i32, %arg1: i32) -> (i32, i32) {
    %c0_i32 = arith.constant 0 : i32
    %c0_i32_0 = arith.constant 0 : i32
    %c0_i32_1 = arith.constant 0 : i32
    return %c0_i32, %c0_i32_0 : i32, i32
  }
  func.func @transform_3(%arg0: i32, %arg1: i32) -> (i32, i32) {
    %c0_i32 = arith.constant 0 : i32
    %c0_i32_0 = arith.constant 0 : i32
    return %arg0, %c0_i32 : i32, i32
  }
}

module attributes {stable_mosaic.version = 11 : i64} {
  func.func @_agg_kernel(%arg0: i32, %arg1: i32, %arg2: memref<256x256xbf16, #tpu.memory_space<vmem>>, %arg3: memref<256x128xbf16, #tpu.memory_space<vmem>>, %arg4: memref<1x128xf32, #tpu.memory_space<vmem>>, %arg5: memref<256x128xf32, #tpu.memory_space<vmem>>, %arg6: memref<256x128xf32, #tpu.memory_space<vmem>>) attributes {dimension_semantics = [#tpu.dimension_semantics<parallel>, #tpu.dimension_semantics<arbitrary>], iteration_bounds = array<i64: 2, 2>, scalar_prefetch = 0 : i64, scratch_operands = 1 : i64, tpu.core_type = #tpu.core_type<tc>, window_params = [{transform_indices = @transform_0, window_bounds = array<i64: 256, 256>}, {transform_indices = @transform_1, window_bounds = array<i64: 256, 128>}, {pipeline_mode = #tpu.pipeline_mode<synchronous>, transform_indices = @transform_2, window_bounds = array<i64: 1, 128>}, {transform_indices = @transform_3, window_bounds = array<i64: 256, 128>}]} {
    %c0_i32 = arith.constant 0 : i32
    %0 = arith.cmpi eq, %arg1, %c0_i32 : i32
    %1 = arith.extui %0 : i1 to i32
    %c0_i32_0 = arith.constant 0 : i32
    %2 = arith.cmpi ne, %1, %c0_i32_0 : i32
    scf.if %2 {
      %cst_9 = arith.constant 0.000000e+00 : f32
      %12 = vector.broadcast %cst_9 : f32 to vector<256x128xf32>
      %c0_10 = arith.constant 0 : index
      %c0_11 = arith.constant 0 : index
      %13 = vector.load %arg6[%c0_10, %c0_11] : memref<256x128xf32, #tpu.memory_space<vmem>>, vector<256x128xf32>
      tpu.vector_store %arg6[%c0_10, %c0_11], %12 {strides = array<i32>} : memref<256x128xf32, #tpu.memory_space<vmem>>, vector<256x128xf32>,
    } else {
    }
    %c0 = arith.constant 0 : index
    %c0_1 = arith.constant 0 : index
    %3 = vector.load %arg6[%c0, %c0_1] : memref<256x128xf32, #tpu.memory_space<vmem>>, vector<256x128xf32>
    %c0_2 = arith.constant 0 : index
    %c0_3 = arith.constant 0 : index
    %4 = vector.load %arg2[%c0_2, %c0_3] : memref<256x256xbf16, #tpu.memory_space<vmem>>, vector<256x256xbf16>
    %c0_4 = arith.constant 0 : index
    %c0_5 = arith.constant 0 : index
    %5 = vector.load %arg3[%c0_4, %c0_5] : memref<256x128xbf16, #tpu.memory_space<vmem>>, vector<256x128xbf16>
    %cst = arith.constant dense<0.000000e+00> : vector<256x128xf32>
    %6 = tpu.matmul %4, %5, %cst {dimension_numbers = #tpu.dot_dimension_numbers<[1], [0], [0], [1], [0, 0, 1, 1], [], []>} : vector<256x256xbf16>, vector<256x128xbf16>, vector<256x128xf32> -> vector<256x128xf32>
    %7 = arith.addf %3, %6 : vector<256x128xf32>
    %c0_6 = arith.constant 0 : index
    %c0_7 = arith.constant 0 : index
    %8 = vector.load %arg6[%c0_6, %c0_7] : memref<256x128xf32, #tpu.memory_space<vmem>>, vector<256x128xf32>
    tpu.vector_store %arg6[%c0_6, %c0_7], %7 {strides = array<i32>} : memref<256x128xf32, #tpu.memory_space<vmem>>, vector<256x128xf32>,
    %c1_i32 = arith.constant 1 : i32
    %9 = arith.cmpi eq, %arg1, %c1_i32 : i32
    %10 = arith.extui %9 : i1 to i32
    %c0_i32_8 = arith.constant 0 : i32
    %11 = arith.cmpi ne, %10, %c0_i32_8 : i32
    scf.if %11 {
      %c0_9 = arith.constant 0 : index
      %c0_10 = arith.constant 0 : index
      %12 = vector.load %arg6[%c0_9, %c0_10] : memref<256x128xf32, #tpu.memory_space<vmem>>, vector<256x128xf32>
      %c0_11 = arith.constant 0 : index
      %c0_12 = arith.constant 0 : index
      %13 = vector.load %arg4[%c0_11, %c0_12] : memref<1x128xf32, #tpu.memory_space<vmem>>, vector<1x128xf32>
      %14 = vector.broadcast %13 : vector<1x128xf32> to vector<256x128xf32>
      %15 = arith.addf %12, %14 : vector<256x128xf32>
      %c0_13 = arith.constant 0 : index
      %c0_14 = arith.constant 0 : index
      %16 = vector.load %arg5[%c0_13, %c0_14] : memref<256x128xf32, #tpu.memory_space<vmem>>, vector<256x128xf32>
      tpu.vector_store %arg5[%c0_13, %c0_14], %15 {strides = array<i32>} : memref<256x128xf32, #tpu.memory_space<vmem>>, vector<256x128xf32>,
    } else {
    }
    return
  }
  func.func @transform_0(%arg0: i32, %arg1: i32) -> (i32, i32) {
    %c0_i32 = arith.constant 0 : i32
    return %arg0, %arg1 : i32, i32
  }
  func.func @transform_1(%arg0: i32, %arg1: i32) -> (i32, i32) {
    %c0_i32 = arith.constant 0 : i32
    %c0_i32_0 = arith.constant 0 : i32
    return %arg1, %c0_i32 : i32, i32
  }
  func.func @transform_2(%arg0: i32, %arg1: i32) -> (i32, i32) {
    %c0_i32 = arith.constant 0 : i32
    %c0_i32_0 = arith.constant 0 : i32
    %c0_i32_1 = arith.constant 0 : i32
    return %c0_i32, %c0_i32_0 : i32, i32
  }
  func.func @transform_3(%arg0: i32, %arg1: i32) -> (i32, i32) {
    %c0_i32 = arith.constant 0 : i32
    %c0_i32_0 = arith.constant 0 : i32
    return %arg0, %c0_i32 : i32, i32
  }
}

</mosaic_0001>

<bundles_post_ra>
// kernel: gcn_forward.2
= control target key start
LH: loop header
LB: loop body
LE: loop exit
PB: predicated region body
PF: predicated region fallthrough
CT: control target
= control target key end

     0   :  { %s1577_s12 = smov 0   ;;  %s1579_s13 = smov 0   ;;  %s1862_s0 = inlined_call_operand.vmem [shape: bf16[512,512], index: 0, kind: input, shape index: {}]   ;;  %s1863_s1 = inlined_call_operand.vmem [shape: bf16[512,128], index: 1, kind: input, shape index: {}]   ;;  %s1864_s2 = inlined_call_operand.vmem [shape: f32[1,128], index: 2, kind: input, shape index: {}]   ;;  %s1865_s3 = inlined_call_operand.vmem [shape: f32[512,128], index: 3, kind: output, shape index: {}]  }
   0x1   :  { %s1581_s14 = smov 0   ;;  %s1583_s15 = smov 0  }
   0x2   :  { %s1585_s16 = smov 0   ;;  %s1587_s17 = smov 0  }
   0x3   :  { %s1589_s18 = smov 0  }
   0x4 LB: > { %s22_s19 = sadd.s32 1, %s1546_s16  ;;  %s25_s20 = sadd.s32 1, %s1550_s17  ;;  %s1554_s18 = sphi %s1589_s18, %s13_s18   ;;  %s1550_s17 = sphi %s1587_s17, %s1871_s17   ;;  %s1546_s16 = sphi %s1585_s16, %s1870_s16   ;;  %s1542_s15 = sphi %s1583_s15, %s1869_s15   ;;  %s1538_s14 = sphi %s1581_s14, %s1868_s14   ;;  %s1534_s13 = sphi %s1579_s13, %s1867_s13   ;;  %s1530_s12 = sphi %s1577_s12, %s1866_s12  }
   0x5   : > { %p23_p0 = scmp.ge.s32.totalorder %s22_s19, 2  ;;  %p41_p1 = scmp.ne.s32.totalorder %s1534_s13, %s1530_s12 }
   0x6   : > { %p42_p2 = scmp.eq.s32.totalorder %s1554_s18, 0  ;;  %s34_s24 = sadd.s32 1, %s1534_s13 }
   0x7   : > { %s1873_s19 = smov (%p23_p0, %s22_s19), 0  ;;  %s1875_s20 = smov (!%p23_p0, %s25_s20), %s1550_s17 }
   0x8   : > { %p43_p3 = por %p42_p2, %p41_p1  ;;  %p27_p4 = scmp.ge.s32.totalorder %s1875_s20, 2 }
   0x9   : > { %s30_s21 = ssub.s32 %s1546_s16, %s1873_s19  ;;  %p1185_p6 = scmp.ge.s32.totalorder %s1554_s18, 4 }
   0xa   : > { %s1877_s20 = smov (%p27_p4, %s1875_s20), 0 }
   0xb   : > { %s29_s22 = ssub.s32 %s1550_s17, %s1877_s20  ;;  %143 = sbr.rel (%p1185_p6) target bundleno = 41 (0x29), region = 20 }
   0xc   : > { %s31_s23 = sor.u32 %s30_s21, %s29_s22 }
   0xd   : > { %p32_p5 = scmp.eq.s32.totalorder %s31_s23, 0 }
   0xf   : > { %s1628_s25 = scalar_select %p32_p5, %s1534_s13, %s34_s24  }
  0x12   : > { %146 = sbr.rel (!%p43_p3) target bundleno = 41 (0x29), region = 24  ;;  %s148_s26 = sand.u32 (%p43_p3), 1, %s1534_s13  }
  0x13   : > { %s1188_s27 = sshll.u32 (%p43_p3), %s1546_s16, 1  ;;  %s1186_s28 = sshll.u32 (%p43_p3), %s148_s26, 8 }
  0x14   : > { %s1250_s29 = sshll.u32 (%p43_p3), %s1550_s17, 7  ;;  %s1642_s8 = scalar_lea.vmem (%p43_p3), [#allocation3], %s1186_s28 }
  0x15   : > { %s154_s30 = sadd.s32 (%p43_p3), %s1250_s29, %s1188_s27 }
  0x16   : > { %s1190_s4 = sshll.u32 (%p43_p3), %s154_s30, 2 }
  0x17   : > { %s1637_s7 = scalar_lea.vmem (%p43_p3), %s1862_s0, %s1190_s4 }
  0x18   : > { %v246_v0 = vld [vmem:[%s1637_s7] sm:$0xff] (%p43_p3)  ;;  %v248_v1 = vld [vmem:[%s1637_s7 + $0x10] sm:$0xff] (%p43_p3) }
  0x19   : > { %v250_v2 = vld [vmem:[%s1637_s7 + $0x20] sm:$0xff]  ;;  %247 = vst [vmem:[%s1642_s8] sm:$0xff] %v246_v0  ;;  %249 = vst [vmem:[%s1642_s8 + $0x8] sm:$0xff] %v248_v1  ;;  %v252_v3 = vld [vmem:[%s1637_s7 + $0x30] sm:$0xff] }
  0x1a   : > { %251 = vst [vmem:[%s1642_s8 + $0x10] sm:$0xff] %v250_v2  ;;  %v254_v4 = vld [vmem:[%s1637_s7 + $0x40] sm:$0xff]  ;;  %v256_v5 = vld [vmem:[%s1637_s7 + $0x50] sm:$0xff]  ;;  %253 = vst [vmem:[%s1642_s8 + $0x18] sm:$0xff] %v252_v3 }
  0x1b   : > { %255 = vst [vmem:[%s1642_s8 + $0x20] sm:$0xff] %v254_v4  ;;  %257 = vst [vmem:[%s1642_s8 + $0x28] sm:$0xff] %v256_v5  ;;  %v258_v6 = vld [vmem:[%s1637_s7 + $0x60] sm:$0xff]  ;;  %v260_v7 = vld [vmem:[%s1637_s7 + $0x70] sm:$0xff] }
  0x1c   : > { %v262_v8 = vld [vmem:[%s1637_s7 + $0x80] sm:$0xff]  ;;  %259 = vst [vmem:[%s1642_s8 + $0x30] sm:$0xff] %v258_v6  ;;  %261 = vst [vmem:[%s1642_s8 + $0x38] sm:$0xff] %v260_v7  ;;  %v264_v9 = vld [vmem:[%s1637_s7 + $0x90] sm:$0xff] }
  0x1d   : > { %263 = vst [vmem:[%s1642_s8 + $0x40] sm:$0xff] %v262_v8  ;;  %v266_v10 = vld [vmem:[%s1637_s7 + $0xa0] sm:$0xff]  ;;  %v268_v11 = vld [vmem:[%s1637_s7 + $0xb0] sm:$0xff]  ;;  %265 = vst [vmem:[%s1642_s8 + $0x48] sm:$0xff] %v264_v9 }
  0x1e   : > { %267 = vst [vmem:[%s1642_s8 + $0x50] sm:$0xff] %v266_v10  ;;  %269 = vst [vmem:[%s1642_s8 + $0x58] sm:$0xff] %v268_v11  ;;  %v270_v12 = vld [vmem:[%s1637_s7 + $0xc0] sm:$0xff]  ;;  %v272_v13 = vld [vmem:[%s1637_s7 + $0xd0] sm:$0xff] }
  0x1f   : > { %v274_v14 = vld [vmem:[%s1637_s7 + $0xe0] sm:$0xff]  ;;  %271 = vst [vmem:[%s1642_s8 + $0x60] sm:$0xff] %v270_v12  ;;  %273 = vst [vmem:[%s1642_s8 + $0x68] sm:$0xff] %v272_v13  ;;  %v276_v15 = vld [vmem:[%s1637_s7 + $0xf0] sm:$0xff] }
  0x20   : > { %275 = vst [vmem:[%s1642_s8 + $0x70] sm:$0xff] %v274_v14  ;;  %v278_v16 = vld [vmem:[%s1637_s7 + $0x100] sm:$0xff]  ;;  %v280_v17 = vld [vmem:[%s1637_s7 + $0x110] sm:$0xff]  ;;  %277 = vst [vmem:[%s1642_s8 + $0x78] sm:$0xff] %v276_v15 }
  0x21   : > { %279 = vst [vmem:[%s1642_s8 + $0x80] sm:$0xff] %v278_v16  ;;  %281 = vst [vmem:[%s1642_s8 + $0x88] sm:$0xff] %v280_v17  ;;  %v282_v18 = vld [vmem:[%s1637_s7 + $0x120] sm:$0xff]  ;;  %v284_v19 = vld [vmem:[%s1637_s7 + $0x130] sm:$0xff] }
  0x22   : > { %v286_v20 = vld [vmem:[%s1637_s7 + $0x140] sm:$0xff]  ;;  %283 = vst [vmem:[%s1642_s8 + $0x90] sm:$0xff] %v282_v18  ;;  %285 = vst [vmem:[%s1642_s8 + $0x98] sm:$0xff] %v284_v19  ;;  %v288_v21 = vld [vmem:[%s1637_s7 + $0x150] sm:$0xff] }
  0x23   : > { %287 = vst [vmem:[%s1642_s8 + $0xa0] sm:$0xff] %v286_v20  ;;  %v290_v22 = vld [vmem:[%s1637_s7 + $0x160] sm:$0xff]  ;;  %v292_v23 = vld [vmem:[%s1637_s7 + $0x170] sm:$0xff]  ;;  %289 = vst [vmem:[%s1642_s8 + $0xa8] sm:$0xff] %v288_v21 }
  0x24   : > { %291 = vst [vmem:[%s1642_s8 + $0xb0] sm:$0xff] %v290_v22  ;;  %293 = vst [vmem:[%s1642_s8 + $0xb8] sm:$0xff] %v292_v23  ;;  %v294_v24 = vld [vmem:[%s1637_s7 + $0x180] sm:$0xff]  ;;  %v296_v25 = vld [vmem:[%s1637_s7 + $0x190] sm:$0xff] }
  0x25   : > { %v298_v26 = vld [vmem:[%s1637_s7 + $0x1a0] sm:$0xff]  ;;  %295 = vst [vmem:[%s1642_s8 + $0xc0] sm:$0xff] %v294_v24  ;;  %297 = vst [vmem:[%s1642_s8 + $0xc8] sm:$0xff] %v296_v25  ;;  %v300_v27 = vld [vmem:[%s1637_s7 + $0x1b0] sm:$0xff] }
  0x26   : > { %299 = vst [vmem:[%s1642_s8 + $0xd0] sm:$0xff] %v298_v26  ;;  %v302_v28 = vld [vmem:[%s1637_s7 + $0x1c0] sm:$0xff]  ;;  %v304_v29 = vld [vmem:[%s1637_s7 + $0x1d0] sm:$0xff]  ;;  %301 = vst [vmem:[%s1642_s8 + $0xd8] sm:$0xff] %v300_v27 }
  0x27   : > { %303 = vst [vmem:[%s1642_s8 + $0xe0] sm:$0xff] %v302_v28  ;;  %305 = vst [vmem:[%s1642_s8 + $0xe8] sm:$0xff] %v304_v29  ;;  %v306_v30 = vld [vmem:[%s1637_s7 + $0x1e0] sm:$0xff]  ;;  %v308_v31 = vld [vmem:[%s1637_s7 + $0x1f0] sm:$0xff] }
  0x28   : > { %307 = vst [vmem:[%s1642_s8 + $0xf0] sm:$0xff] %v306_v30  ;;  %309 = vst [vmem:[%s1642_s8 + $0xf8] sm:$0xff] %v308_v31 }
  0x29 PF: > { %p1191_p7 = scmp.ge.s32.totalorder %s1554_s18, 1  ;;  %p323_p8 = scmp.lt.s32.totalorder %s1554_s18, 5 }
  0x2b   : > { %p324_p9 = pnand %p1191_p7, %p323_p8 }
  0x2c   : > { %s330_s9 = sand.u32 (!%p324_p9), 1, %s1530_s12   ;;  %s1193_s10 = sshll.u32 (!%p324_p9), %s1538_s14, 5 }
  0x2d   : > { %327 = sbr.rel (%p324_p9) target bundleno = 390 (0x186), region = 66  ;;  %s1192_s11 = sshll.u32 (!%p324_p9), %s330_s9, 8 }
  0x2e   : > { %p361_p10 = scmp.lt.s32.totalorder (!%p324_p9), %s1193_s10, 63  ;;  %s1195_s21 = sshll.u32 (!%p324_p9), %s1542_s15, 5 }
  0x2f   : > { %p367_p11 = scmp.lt.s32.totalorder (!%p324_p9), %s1195_s21, 63  ;;  %s1720_s12 = scalar_lea.vmem (!%p324_p9), [#allocation3], %s1192_s11 }
  0x30   : > { %p1197_p12 = scmp.ne.s32.totalorder (!%p324_p9), %s1538_s14, 0 }
  0x34   : > { %s1879_s10 = smov (!%p361_p10, %s1193_s10), 63  ;;  %s1881_s21 = smov (!%p367_p11, %s1195_s21), 63 }
  0x35   : > { %s1194_s22 = sshll.u32 %s1879_s10, 2  ;;  %s1196_s27 = sshll.u32 %s1881_s21, 3  ;;  %v1556_v32 = vmov (!%p1197_p12), 0.0  }
  0x36   : > { %s1713_s26 = scalar_lea.vmem %s1863_s1, %s1194_s22  ;;  %s1718_s30 = scalar_lea.vmem %s1865_s3, %s1196_s27  ;;  %377 = vst [vmem:[#allocation2] sm:$0xff] (!%p1197_p12), %v1556_v32  ;;  %378 = vst [vmem:[#allocation2 + $0x8] sm:$0xff] (!%p1197_p12), %v1556_v32 }
  0x37   : > { %376 = sbr.rel (%p1197_p12) target bundleno = 70 (0x46), region = 74  ;;  %379 = vst [vmem:[#allocation2 + $0x10] sm:$0xff] (!%p1197_p12), %v1556_v32  ;;  %380 = vst [vmem:[#allocation2 + $0x18] sm:$0xff] (!%p1197_p12), %v1556_v32 }
  0x38   : > { %381 = vst [vmem:[#allocation2 + $0x20] sm:$0xff] (!%p1197_p12), %v1556_v32  ;;  %382 = vst [vmem:[#allocation2 + $0x28] sm:$0xff] (!%p1197_p12), %v1556_v32 }
  0x39   : > { %383 = vst [vmem:[#allocation2 + $0x30] sm:$0xff] (!%p1197_p12), %v1556_v32  ;;  %384 = vst [vmem:[#allocation2 + $0x38] sm:$0xff] (!%p1197_p12), %v1556_v32 }
  0x3a   : > { %385 = vst [vmem:[#allocation2 + $0x40] sm:$0xff] (!%p1197_p12), %v1556_v32  ;;  %386 = vst [vmem:[#allocation2 + $0x48] sm:$0xff] (!%p1197_p12), %v1556_v32 }
  0x3b   : > { %387 = vst [vmem:[#allocation2 + $0x50] sm:$0xff] (!%p1197_p12), %v1556_v32  ;;  %388 = vst [vmem:[#allocation2 + $0x58] sm:$0xff] (!%p1197_p12), %v1556_v32 }
  0x3c   : > { %389 = vst [vmem:[#allocation2 + $0x60] sm:$0xff] (!%p1197_p12), %v1556_v32  ;;  %390 = vst [vmem:[#allocation2 + $0x68] sm:$0xff] (!%p1197_p12), %v1556_v32 }
  0x3d   : > { %391 = vst [vmem:[#allocation2 + $0x70] sm:$0xff] (!%p1197_p12), %v1556_v32  ;;  %392 = vst [vmem:[#allocation2 + $0x78] sm:$0xff] (!%p1197_p12), %v1556_v32 }
  0x3e   : > { %393 = vst [vmem:[#allocation2 + $0x80] sm:$0xff] %v1556_v32  ;;  %394 = vst [vmem:[#allocation2 + $0x88] sm:$0xff] %v1556_v32 }
  0x3f   : > { %395 = vst [vmem:[#allocation2 + $0x90] sm:$0xff] %v1556_v32  ;;  %396 = vst [vmem:[#allocation2 + $0x98] sm:$0xff] %v1556_v32 }
  0x40   : > { %397 = vst [vmem:[#allocation2 + $0xa0] sm:$0xff] %v1556_v32  ;;  %398 = vst [vmem:[#allocation2 + $0xa8] sm:$0xff] %v1556_v32 }
  0x41   : > { %399 = vst [vmem:[#allocation2 + $0xb0] sm:$0xff] %v1556_v32  ;;  %400 = vst [vmem:[#allocation2 + $0xb8] sm:$0xff] %v1556_v32 }
  0x42   : > { %401 = vst [vmem:[#allocation2 + $0xc0] sm:$0xff] %v1556_v32  ;;  %402 = vst [vmem:[#allocation2 + $0xc8] sm:$0xff] %v1556_v32 }
  0x43   : > { %403 = vst [vmem:[#allocation2 + $0xd0] sm:$0xff] %v1556_v32  ;;  %404 = vst [vmem:[#allocation2 + $0xd8] sm:$0xff] %v1556_v32 }
  0x44   : > { %405 = vst [vmem:[#allocation2 + $0xe0] sm:$0xff] %v1556_v32  ;;  %406 = vst [vmem:[#allocation2 + $0xe8] sm:$0xff] %v1556_v32 }
  0x45   : > { %407 = vst [vmem:[#allocation2 + $0xf0] sm:$0xff] %v1556_v32  ;;  %408 = vst [vmem:[#allocation2 + $0xf8] sm:$0xff] %v1556_v32 }
  0x46 PF: > { %v1436_v33 = vld [vmem:[%s1713_s26 + $0x40] sm:$0xff]   ;;  %v1438_v35 = vld [vmem:[%s1713_s26 + $0x48] sm:$0xff]   ;;  %v1440_v37 = vld [vmem:[%s1713_s26 + $0x50] sm:$0xff]   ;;  %p1246_p13 = scmp.ne.s32.totalorder %s1538_s14, 1 }
  0x47   : > { %v1437_v34 = vld [vmem:[%s1713_s26] sm:$0xff]   ;;  %1251 = vmatprep.subr.bf16.mxu0 %v1436_v33  ;;  %1363 = vmatprep.subr.bf16.mxu1 %v1436_v33  ;;  %v1439_v36 = vld [vmem:[%s1713_s26 + $0x8] sm:$0xff]   ;;  %v1441_v38 = vld [vmem:[%s1713_s26 + $0x10] sm:$0xff]  }
  0x48   : > { %1252 = vmatpush3.bf16.msra.mxu0 %v1437_v34  ;;  %1371 = vmatpush3.bf16.msra.mxu1 %v1437_v34  ;;  %v1442_v39 = vld [vmem:[%s1713_s26 + $0x58] sm:$0xff]   ;;  %v1444_v41 = vld [vmem:[%s1713_s26 + $0x60] sm:$0xff]   ;;  %v1446_v43 = vld [vmem:[%s1713_s26 + $0x68] sm:$0xff]  }
  0x49   : > { %1253 = vmatprep.subr.bf16.mxu0 %v1438_v35  ;;  %1364 = vmatprep.subr.bf16.mxu1 %v1438_v35  ;;  %v1443_v40 = vld [vmem:[%s1713_s26 + $0x18] sm:$0xff]   ;;  %v1445_v42 = vld [vmem:[%s1713_s26 + $0x20] sm:$0xff]   ;;  %v1447_v46 = vld [vmem:[%s1713_s26 + $0x28] sm:$0xff]  }
  0x4a   : > { %v1454_v44 = vld [vmem:[%s1720_s12 + $0x4] ss:$8 sps:$4 sm:$0xff]   ;;  %v1448_v47 = vld [vmem:[%s1713_s26 + $0x70] sm:$0xff]   ;;  %v1450_v49 = vld [vmem:[%s1713_s26 + $0x78] sm:$0xff]  }
  0x4b   : > { %v1457_v45 = vld [vmem:[%s1720_s12 + $0x84] ss:$8 sps:$4 sm:$0xff]   ;;  %793 = vmatprep.mubr.bf16.mxu0 %v1454_v44  ;;  %v1449_v48 = vld [vmem:[%s1713_s26 + $0x30] sm:$0xff]   ;;  %v1451_v50 = vld [vmem:[%s1713_s26 + $0x38] sm:$0xff]  }
  0x4c   : > { %1254 = vmatpush3.bf16.msra.mxu0 %v1439_v36  ;;  %1372 = vmatpush3.bf16.msra.mxu1 %v1439_v36  ;;  %v1452_v51 = vld [vmem:[%s1720_s12] ss:$8 sps:$4 sm:$0xff]   ;;  %v1458_v53 = vld [vmem:[%s1720_s12 + $0x14] ss:$8 sps:$4 sm:$0xff]   ;;  %v1462_v55 = vld [vmem:[%s1720_s12 + $0x10] ss:$8 sps:$4 sm:$0xff]  }
  0x4d   : > { %1255 = vmatprep.subr.bf16.mxu0 %v1440_v37  ;;  %1365 = vmatprep.subr.bf16.mxu1 %v1440_v37  ;;  %v1455_v52 = vld [vmem:[%s1720_s12 + $0x80] ss:$8 sps:$4 sm:$0xff]   ;;  %v1460_v54 = vld [vmem:[%s1720_s12 + $0x94] ss:$8 sps:$4 sm:$0xff]   ;;  %v1463_v56 = vld [vmem:[%s1720_s12 + $0x90] ss:$8 sps:$4 sm:$0xff]  }
  0x4e   : > { %857 = vmatprep.mubr.bf16.mxu1 %v1457_v45  ;;  %v1464_v57 = vld [vmem:[%s1720_s12 + $0x24] ss:$8 sps:$4 sm:$0xff]   ;;  %v1468_v59 = vld [vmem:[%s1720_s12 + $0x20] ss:$8 sps:$4 sm:$0xff]   ;;  %v1470_v61 = vld [vmem:[%s1720_s12 + $0x34] ss:$8 sps:$4 sm:$0xff]  }
  0x4f   : > { %v1466_v58 = vld [vmem:[%s1720_s12 + $0xa4] ss:$8 sps:$4 sm:$0xff]   ;;  %v1469_v60 = vld [vmem:[%s1720_s12 + $0xa0] ss:$8 sps:$4 sm:$0xff]   ;;  %v1472_v62 = vld [vmem:[%s1720_s12 + $0xb4] ss:$8 sps:$4 sm:$0xff]  }
  0x50   : > { %1256 = vmatpush3.bf16.msra.mxu0 %v1441_v38  ;;  %1373 = vmatpush3.bf16.msra.mxu1 %v1441_v38  ;;  %v1474_v63 = vld [vmem:[%s1720_s12 + $0x30] ss:$8 sps:$4 sm:$0xff]   ;;  %v1476_v1 = vld [vmem:[%s1720_s12 + $0x44] ss:$8 sps:$4 sm:$0xff]   ;;  %v1480_v3 = vld [vmem:[%s1720_s12 + $0x40] ss:$8 sps:$4 sm:$0xff]  }
  0x51   : > { %1257 = vmatprep.subr.bf16.mxu0 %v1442_v39  ;;  %1366 = vmatprep.subr.bf16.mxu1 %v1442_v39  ;;  %v1475_v0 = vld [vmem:[%s1720_s12 + $0xb0] ss:$8 sps:$4 sm:$0xff]   ;;  %v1478_v2 = vld [vmem:[%s1720_s12 + $0xc4] ss:$8 sps:$4 sm:$0xff]   ;;  %v1481_v4 = vld [vmem:[%s1720_s12 + $0xc0] ss:$8 sps:$4 sm:$0xff]  }
  0x52   : > { %v1482_v5 = vld [vmem:[%s1720_s12 + $0x54] ss:$8 sps:$4 sm:$0xff]   ;;  %v1486_v7 = vld [vmem:[%s1720_s12 + $0x50] ss:$8 sps:$4 sm:$0xff]   ;;  %v1488_v9 = vld [vmem:[%s1720_s12 + $0x64] ss:$8 sps:$4 sm:$0xff]  }
  0x53   : > { %v1484_v6 = vld [vmem:[%s1720_s12 + $0xd4] ss:$8 sps:$4 sm:$0xff]   ;;  %v1487_v8 = vld [vmem:[%s1720_s12 + $0xd0] ss:$8 sps:$4 sm:$0xff]   ;;  %v1490_v10 = vld [vmem:[%s1720_s12 + $0xe4] ss:$8 sps:$4 sm:$0xff]  }
  0x54   : > { %1258 = vmatpush3.bf16.msra.mxu0 %v1443_v40  ;;  %1374 = vmatpush3.bf16.msra.mxu1 %v1443_v40  ;;  %v1492_v11 = vld [vmem:[%s1720_s12 + $0x60] ss:$8 sps:$4 sm:$0xff]   ;;  %v1494_v13 = vld [vmem:[%s1720_s12 + $0x74] ss:$8 sps:$4 sm:$0xff]   ;;  %v1498_v15 = vld [vmem:[%s1720_s12 + $0x70] ss:$8 sps:$4 sm:$0xff]  }
  0x55   : > { %1259 = vmatprep.subr.bf16.mxu0 %v1444_v41  ;;  %1367 = vmatprep.subr.bf16.mxu1 %v1444_v41  ;;  %v1493_v12 = vld [vmem:[%s1720_s12 + $0xe0] ss:$8 sps:$4 sm:$0xff]   ;;  %v1496_v14 = vld [vmem:[%s1720_s12 + $0xf4] ss:$8 sps:$4 sm:$0xff]   ;;  %v1499_v16 = vld [vmem:[%s1720_s12 + $0xf0] ss:$8 sps:$4 sm:$0xff]  }
  0x56   : > { %v409_v19 = vld [vmem:[#allocation2] sm:$0xff]  ;;  %v410_v27 = vld [vmem:[#allocation2 + $0x8] sm:$0xff]  ;;  %v411_v39 = vld [vmem:[#allocation2 + $0x10] sm:$0xff] }
  0x57   : > { %v425_v21 = vld [vmem:[#allocation2 + $0x80] sm:$0xff]  ;;  %v426_v29 = vld [vmem:[#allocation2 + $0x88] sm:$0xff]  ;;  %v427_v41 = vld [vmem:[#allocation2 + $0x90] sm:$0xff] }
  0x58   : > { %1260 = vmatpush3.bf16.msra.mxu0 %v1445_v42  ;;  %1375 = vmatpush3.bf16.msra.mxu1 %v1445_v42 }
  0x59   : > { %1261 = vmatprep.subr.bf16.mxu0 %v1446_v43  ;;  %1368 = vmatprep.subr.bf16.mxu1 %v1446_v43 }
  0x5c   : > { %1262 = vmatpush3.bf16.msra.mxu0 %v1447_v46  ;;  %1376 = vmatpush3.bf16.msra.mxu1 %v1447_v46 }
  0x5d   : > { %1263 = vmatprep.subr.bf16.mxu0 %v1448_v47  ;;  %1369 = vmatprep.subr.bf16.mxu1 %v1448_v47  ;;  %v412_v47 = vld [vmem:[#allocation2 + $0x18] sm:$0xff] }
  0x60   : > { %1264 = vmatpush3.bf16.msra.mxu0 %v1449_v48  ;;  %1377 = vmatpush3.bf16.msra.mxu1 %v1449_v48 }
  0x61   : > { %1265 = vmatprep.subr.bf16.mxu0 %v1450_v49  ;;  %1370 = vmatprep.subr.bf16.mxu1 %v1450_v49  ;;  %v428_v49 = vld [vmem:[#allocation2 + $0x98] sm:$0xff] }
  0x64   : > { %1266 = vmatpush3.bf16.msra.mxu0 %v1451_v50  ;;  %1378 = vmatpush3.bf16.msra.mxu1 %v1451_v50 }
  0x67   : > { %794 = vmatmul.mubr.bf16.vlgmr.msra.gmra.mrb[0].mxu0 %v1452_v51  ;;  %858 = vmatmul.mubr.bf16.vlgmr.msra.gmra.mrb[0].mxu1 %v1455_v52 }
  0x68   : > { %801 = vmatprep.mubr.bf16.mxu0 %v1458_v53  ;;  %865 = vmatprep.mubr.bf16.mxu1 %v1460_v54 }
  0x6f   : > { %802 = vmatmul.mubr.bf16.gmra.mrb[4].mxu0 %v1462_v55  ;;  %866 = vmatmul.mubr.bf16.gmra.mrb[4].mxu1 %v1463_v56 }
  0x70   : > { %809 = vmatprep.mubr.bf16.mxu0 %v1464_v57  ;;  %873 = vmatprep.mubr.bf16.mxu1 %v1466_v58 }
  0x77   : > { %810 = vmatmul.mubr.bf16.gmra.mrb[8].mxu0 %v1468_v59  ;;  %874 = vmatmul.mubr.bf16.gmra.mrb[8].mxu1 %v1469_v60  ;;  %v413_v59 = vld [vmem:[#allocation2 + $0x20] sm:$0xff] }
  0x78   : > { %817 = vmatprep.mubr.bf16.mxu0 %v1470_v61  ;;  %881 = vmatprep.mubr.bf16.mxu1 %v1472_v62  ;;  %v429_v61 = vld [vmem:[#allocation2 + $0xa0] sm:$0xff] }
  0x7f   : > { %818 = vmatmul.mubr.bf16.gmra.mrb[12].mxu0 %v1474_v63  ;;  %882 = vmatmul.mubr.bf16.gmra.mrb[12].mxu1 %v1475_v0 }
  0x80   : > { %825 = vmatprep.mubr.bf16.mxu0 %v1476_v1  ;;  %889 = vmatprep.mubr.bf16.mxu1 %v1478_v2 }
  0x87   : > { %826 = vmatmul.mubr.bf16.gmra.mrb[16].mxu0 %v1480_v3  ;;  %890 = vmatmul.mubr.bf16.gmra.mrb[16].mxu1 %v1481_v4  ;;  %v414_v3 = vld [vmem:[#allocation2 + $0x28] sm:$0xff] }
  0x88   : > { %833 = vmatprep.mubr.bf16.mxu0 %v1482_v5  ;;  %897 = vmatprep.mubr.bf16.mxu1 %v1484_v6  ;;  %v430_v5 = vld [vmem:[#allocation2 + $0xa8] sm:$0xff] }
  0x8f   : > { %834 = vmatmul.mubr.bf16.gmra.mrb[20].mxu0 %v1486_v7  ;;  %898 = vmatmul.mubr.bf16.gmra.mrb[20].mxu1 %v1487_v8 }
  0x90   : > { %841 = vmatprep.mubr.bf16.mxu0 %v1488_v9  ;;  %905 = vmatprep.mubr.bf16.mxu1 %v1490_v10 }
  0x97   : > { %842 = vmatmul.mubr.bf16.gmra.mrb[24].mxu0 %v1492_v11  ;;  %906 = vmatmul.mubr.bf16.gmra.mrb[24].mxu1 %v1493_v12 }
  0x98   : > { %849 = vmatprep.mubr.bf16.mxu0 %v1494_v13  ;;  %913 = vmatprep.mubr.bf16.mxu1 %v1496_v14 }
  0x9f   : > { %850 = vmatmul.mubr.bf16.gmra.mrb[28].mxu0 %v1498_v15  ;;  %914 = vmatmul.mubr.bf16.gmra.mrb[28].mxu1 %v1499_v16  ;;  %v415_v15 = vld [vmem:[#allocation2 + $0x30] sm:$0xff] }
 0x13a   : > { %v1267_v17 = vpop.f32.mrb[0].mxu0  ;;  %v1315_v18 = vpop.f32.mrb[0].mxu1 }
 0x13b   : > { %v1268_v20 = vpop.f32.mrb[1].mxu0  ;;  %v1316_v22 = vpop.f32.mrb[1].mxu1 }
 0x13c   : > { %v1269_v23 = vadd.f32 %v1268_v20, %v1267_v17  ;;  %v1317_v24 = vadd.f32 %v1316_v22, %v1315_v18  ;;  %v1270_v25 = vpop.f32.mrb[2].mxu0  ;;  %v1318_v26 = vpop.f32.mrb[2].mxu1  ;;  %v431_v17 = vld [vmem:[#allocation2 + $0xb0] sm:$0xff] }
 0x13d   : > { %v1271_v28 = vpop.f32.mrb[3].mxu0  ;;  %v1319_v30 = vpop.f32.mrb[3].mxu1 }
 0x13e   : > { %v922_v31 = vadd.f32 %v1269_v23, %v409_v19  ;;  %v938_v32 = vadd.f32 %v1317_v24, %v425_v21  ;;  %v1272_v33 = vadd.f32 %v1271_v28, %v1270_v25  ;;  %v1320_v34 = vadd.f32 %v1319_v30, %v1318_v26  ;;  %v416_v23 = vld [vmem:[#allocation2 + $0x38] sm:$0xff] }
 0x13f   : > { %v432_v25 = vld [vmem:[#allocation2 + $0xb8] sm:$0xff] }
 0x140   : > { %954 = vst [vmem:[#allocation2] sm:$0xff] %v922_v31  ;;  %970 = vst [vmem:[#allocation2 + $0x80] sm:$0xff] %v938_v32  ;;  %v923_v35 = vadd.f32 %v1272_v33, %v410_v27  ;;  %v939_v36 = vadd.f32 %v1320_v34, %v426_v29 }
 0x142   : > { %955 = vst [vmem:[#allocation2 + $0x8] sm:$0xff] %v923_v35  ;;  %971 = vst [vmem:[#allocation2 + $0x88] sm:$0xff] %v939_v36  ;;  %v1273_v37 = vpop.f32.mrb[4].mxu0  ;;  %v1321_v38 = vpop.f32.mrb[4].mxu1  ;;  %v417_v35 = vld [vmem:[#allocation2 + $0x40] sm:$0xff] }
 0x143   : > { %v1274_v40 = vpop.f32.mrb[5].mxu0  ;;  %v1322_v42 = vpop.f32.mrb[5].mxu1 }
 0x144   : > { %v1275_v43 = vadd.f32 %v1274_v40, %v1273_v37  ;;  %v1323_v44 = vadd.f32 %v1322_v42, %v1321_v38  ;;  %v1276_v45 = vpop.f32.mrb[6].mxu0  ;;  %v1324_v46 = vpop.f32.mrb[6].mxu1  ;;  %v433_v37 = vld [vmem:[#allocation2 + $0xc0] sm:$0xff] }
 0x145   : > { %v1277_v48 = vpop.f32.mrb[7].mxu0  ;;  %v1325_v50 = vpop.f32.mrb[7].mxu1 }
 0x146   : > { %v924_v51 = vadd.f32 %v1275_v43, %v411_v39  ;;  %v940_v52 = vadd.f32 %v1323_v44, %v427_v41  ;;  %v1278_v53 = vadd.f32 %v1277_v48, %v1276_v45  ;;  %v1326_v54 = vadd.f32 %v1325_v50, %v1324_v46  ;;  %v418_v43 = vld [vmem:[#allocation2 + $0x48] sm:$0xff] }
 0x147   : > { %v434_v45 = vld [vmem:[#allocation2 + $0xc8] sm:$0xff] }
 0x148   : > { %956 = vst [vmem:[#allocation2 + $0x10] sm:$0xff] %v924_v51  ;;  %972 = vst [vmem:[#allocation2 + $0x90] sm:$0xff] %v940_v52  ;;  %v925_v55 = vadd.f32 %v1278_v53, %v412_v47  ;;  %v941_v56 = vadd.f32 %v1326_v54, %v428_v49 }
 0x14a   : > { %957 = vst [vmem:[#allocation2 + $0x18] sm:$0xff] %v925_v55  ;;  %973 = vst [vmem:[#allocation2 + $0x98] sm:$0xff] %v941_v56  ;;  %v1279_v57 = vpop.f32.mrb[8].mxu0  ;;  %v1327_v58 = vpop.f32.mrb[8].mxu1  ;;  %v419_v55 = vld [vmem:[#allocation2 + $0x50] sm:$0xff] }
 0x14b   : > { %v1280_v60 = vpop.f32.mrb[9].mxu0  ;;  %v1328_v62 = vpop.f32.mrb[9].mxu1 }
 0x14c   : > { %v1281_v63 = vadd.f32 %v1280_v60, %v1279_v57  ;;  %v1329_v0 = vadd.f32 %v1328_v62, %v1327_v58  ;;  %v1282_v1 = vpop.f32.mrb[10].mxu0  ;;  %v1330_v2 = vpop.f32.mrb[10].mxu1  ;;  %v435_v57 = vld [vmem:[#allocation2 + $0xd0] sm:$0xff] }
 0x14d   : > { %v1283_v4 = vpop.f32.mrb[11].mxu0  ;;  %v1331_v6 = vpop.f32.mrb[11].mxu1 }
 0x14e   : > { %v926_v7 = vadd.f32 %v1281_v63, %v413_v59  ;;  %v942_v8 = vadd.f32 %v1329_v0, %v429_v61  ;;  %v1284_v9 = vadd.f32 %v1283_v4, %v1282_v1  ;;  %v1332_v10 = vadd.f32 %v1331_v6, %v1330_v2  ;;  %v420_v63 = vld [vmem:[#allocation2 + $0x58] sm:$0xff] }
 0x14f   : > { %v436_v1 = vld [vmem:[#allocation2 + $0xd8] sm:$0xff] }
 0x150   : > { %958 = vst [vmem:[#allocation2 + $0x20] sm:$0xff] %v926_v7  ;;  %974 = vst [vmem:[#allocation2 + $0xa0] sm:$0xff] %v942_v8  ;;  %v927_v11 = vadd.f32 %v1284_v9, %v414_v3  ;;  %v943_v12 = vadd.f32 %v1332_v10, %v430_v5 }
 0x152   : > { %959 = vst [vmem:[#allocation2 + $0x28] sm:$0xff] %v927_v11  ;;  %975 = vst [vmem:[#allocation2 + $0xa8] sm:$0xff] %v943_v12  ;;  %v1285_v13 = vpop.f32.mrb[12].mxu0  ;;  %v1333_v14 = vpop.f32.mrb[12].mxu1  ;;  %v421_v11 = vld [vmem:[#allocation2 + $0x60] sm:$0xff] }
 0x153   : > { %v1286_v16 = vpop.f32.mrb[13].mxu0  ;;  %v1334_v18 = vpop.f32.mrb[13].mxu1 }
 0x154   : > { %v1287_v19 = vadd.f32 %v1286_v16, %v1285_v13  ;;  %v1335_v20 = vadd.f32 %v1334_v18, %v1333_v14  ;;  %v1288_v21 = vpop.f32.mrb[14].mxu0  ;;  %v1336_v22 = vpop.f32.mrb[14].mxu1  ;;  %v437_v13 = vld [vmem:[#allocation2 + $0xe0] sm:$0xff] }
 0x155   : > { %v1289_v24 = vpop.f32.mrb[15].mxu0  ;;  %v1337_v26 = vpop.f32.mrb[15].mxu1 }
 0x156   : > { %v928_v27 = vadd.f32 %v1287_v19, %v415_v15  ;;  %v944_v28 = vadd.f32 %v1335_v20, %v431_v17  ;;  %v1290_v29 = vadd.f32 %v1289_v24, %v1288_v21  ;;  %v1338_v30 = vadd.f32 %v1337_v26, %v1336_v22  ;;  %v422_v19 = vld [vmem:[#allocation2 + $0x68] sm:$0xff] }
 0x157   : > { %v438_v21 = vld [vmem:[#allocation2 + $0xe8] sm:$0xff] }
 0x158   : > { %960 = vst [vmem:[#allocation2 + $0x30] sm:$0xff] %v928_v27  ;;  %976 = vst [vmem:[#allocation2 + $0xb0] sm:$0xff] %v944_v28  ;;  %v929_v31 = vadd.f32 %v1290_v29, %v416_v23  ;;  %v945_v32 = vadd.f32 %v1338_v30, %v432_v25 }
 0x15a   : > { %961 = vst [vmem:[#allocation2 + $0x38] sm:$0xff] %v929_v31  ;;  %977 = vst [vmem:[#allocation2 + $0xb8] sm:$0xff] %v945_v32  ;;  %v1291_v33 = vpop.f32.mrb[16].mxu0  ;;  %v1339_v34 = vpop.f32.mrb[16].mxu1  ;;  %v423_v31 = vld [vmem:[#allocation2 + $0x70] sm:$0xff] }
 0x15b   : > { %v1292_v36 = vpop.f32.mrb[17].mxu0  ;;  %v1340_v38 = vpop.f32.mrb[17].mxu1 }
 0x15c   : > { %v1293_v39 = vadd.f32 %v1292_v36, %v1291_v33  ;;  %v1341_v40 = vadd.f32 %v1340_v38, %v1339_v34  ;;  %v1294_v41 = vpop.f32.mrb[18].mxu0  ;;  %v1342_v42 = vpop.f32.mrb[18].mxu1  ;;  %v439_v33 = vld [vmem:[#allocation2 + $0xf0] sm:$0xff] }
 0x15d   : > { %v1295_v44 = vpop.f32.mrb[19].mxu0  ;;  %v1343_v46 = vpop.f32.mrb[19].mxu1 }
 0x15e   : > { %v930_v47 = vadd.f32 %v1293_v39, %v417_v35  ;;  %v946_v48 = vadd.f32 %v1341_v40, %v433_v37  ;;  %v1296_v49 = vadd.f32 %v1295_v44, %v1294_v41  ;;  %v1344_v50 = vadd.f32 %v1343_v46, %v1342_v42  ;;  %v424_v39 = vld [vmem:[#allocation2 + $0x78] sm:$0xff] }
 0x15f   : > { %v440_v41 = vld [vmem:[#allocation2 + $0xf8] sm:$0xff] }
 0x160   : > { %962 = vst [vmem:[#allocation2 + $0x40] sm:$0xff] %v930_v47  ;;  %978 = vst [vmem:[#allocation2 + $0xc0] sm:$0xff] %v946_v48  ;;  %v931_v51 = vadd.f32 %v1296_v49, %v418_v43  ;;  %v947_v52 = vadd.f32 %v1344_v50, %v434_v45  ;;  %v990_v49 = vld [vmem:[#allocation2] sm:$0xff] (!%p1246_p13) }
 0x161   : > { %v1775_v50 = vld [vmem:[%s1864_s2] ss:$0 sm:$0xff] (!%p1246_p13) }
 0x162   : > { %963 = vst [vmem:[#allocation2 + $0x48] sm:$0xff] %v931_v51  ;;  %979 = vst [vmem:[#allocation2 + $0xc8] sm:$0xff] %v947_v52  ;;  %v1297_v53 = vpop.f32.mrb[20].mxu0  ;;  %v1345_v54 = vpop.f32.mrb[20].mxu1  ;;  %v991_v51 = vld [vmem:[#allocation2 + $0x8] sm:$0xff] (!%p1246_p13)  ;;  %v1029_v52 = vadd.f32 (!%p1246_p13), %v1775_v50, %v990_v49 }
 0x163   : > { %v1298_v56 = vpop.f32.mrb[21].mxu0  ;;  %v1346_v58 = vpop.f32.mrb[21].mxu1 }
 0x164   : > { %v1299_v59 = vadd.f32 %v1298_v56, %v1297_v53  ;;  %v1347_v60 = vadd.f32 %v1346_v58, %v1345_v54  ;;  %v1300_v61 = vpop.f32.mrb[22].mxu0  ;;  %v1348_v62 = vpop.f32.mrb[22].mxu1  ;;  %v1030_v53 = vadd.f32 (!%p1246_p13), %v1775_v50, %v991_v51  ;;  %v992_v54 = vld [vmem:[#allocation2 + $0x10] sm:$0xff] (!%p1246_p13)  ;;  %v994_v56 = vld [vmem:[#allocation2 + $0x20] sm:$0xff] (!%p1246_p13)  ;;  %1061 = vst [vmem:[%s1718_s30] sm:$0xff] (!%p1246_p13), %v1029_v52 }
 0x165   : > { %v1301_v0 = vpop.f32.mrb[23].mxu0  ;;  %v1349_v2 = vpop.f32.mrb[23].mxu1 }
 0x166   : > { %v932_v3 = vadd.f32 %v1299_v59, %v419_v55  ;;  %v948_v4 = vadd.f32 %v1347_v60, %v435_v57  ;;  %v1302_v5 = vadd.f32 %v1301_v0, %v1300_v61  ;;  %v1350_v6 = vadd.f32 %v1349_v2, %v1348_v62  ;;  %v993_v55 = vld [vmem:[#allocation2 + $0x18] sm:$0xff] (!%p1246_p13)  ;;  %v995_v60 = vld [vmem:[#allocation2 + $0x28] sm:$0xff] (!%p1246_p13)  ;;  %v996_v61 = vld [vmem:[#allocation2 + $0x30] sm:$0xff] (!%p1246_p13)  ;;  %1062 = vst [vmem:[%s1718_s30 + $0x8] sm:$0xff] (!%p1246_p13), %v1030_v53 }
 0x167   : > { %v1031_v57 = vadd.f32 (!%p1246_p13), %v1775_v50, %v992_v54  ;;  %v1032_v58 = vadd.f32 (!%p1246_p13), %v1775_v50, %v993_v55  ;;  %v1033_v59 = vadd.f32 (!%p1246_p13), %v1775_v50, %v994_v56  ;;  %v997_v62 = vld [vmem:[#allocation2 + $0x38] sm:$0xff] (!%p1246_p13)  ;;  %v1035_v0 = vadd.f32 (!%p1246_p13), %v1775_v50, %v996_v61  ;;  %v998_v2 = vld [vmem:[#allocation2 + $0x40] sm:$0xff] (!%p1246_p13) }
 0x168   : > { %964 = vst [vmem:[#allocation2 + $0x50] sm:$0xff] %v932_v3  ;;  %980 = vst [vmem:[#allocation2 + $0xd0] sm:$0xff] %v948_v4  ;;  %v933_v7 = vadd.f32 %v1302_v5, %v420_v63  ;;  %v949_v8 = vadd.f32 %v1350_v6, %v436_v1  ;;  %v1034_v63 = vadd.f32 (!%p1246_p13), %v1775_v50, %v995_v60 }
 0x169   : > { %v1036_v1 = vadd.f32 (!%p1246_p13), %v1775_v50, %v997_v62  ;;  %v999_v3 = vld [vmem:[#allocation2 + $0x48] sm:$0xff] (!%p1246_p13)  ;;  %1063 = vst [vmem:[%s1718_s30 + $0x10] sm:$0xff] (!%p1246_p13), %v1031_v57  ;;  %1064 = vst [vmem:[%s1718_s30 + $0x18] sm:$0xff] (!%p1246_p13), %v1032_v58  ;;  %v1037_v5 = vadd.f32 (!%p1246_p13), %v1775_v50, %v998_v2 }
 0x16a   : > { %965 = vst [vmem:[#allocation2 + $0x58] sm:$0xff] %v933_v7  ;;  %981 = vst [vmem:[#allocation2 + $0xd8] sm:$0xff] %v949_v8  ;;  %v1303_v9 = vpop.f32.mrb[24].mxu0  ;;  %v1351_v10 = vpop.f32.mrb[24].mxu1  ;;  %v1038_v6 = vadd.f32 (!%p1246_p13), %v1775_v50, %v999_v3 }
 0x16b   : > { %v1304_v12 = vpop.f32.mrb[25].mxu0  ;;  %v1352_v14 = vpop.f32.mrb[25].mxu1  ;;  %1065 = vst [vmem:[%s1718_s30 + $0x20] sm:$0xff] (!%p1246_p13), %v1033_v59  ;;  %1066 = vst [vmem:[%s1718_s30 + $0x28] sm:$0xff] (!%p1246_p13), %v1034_v63 }
 0x16c   : > { %v1305_v15 = vadd.f32 %v1304_v12, %v1303_v9  ;;  %v1353_v16 = vadd.f32 %v1352_v14, %v1351_v10  ;;  %v1306_v17 = vpop.f32.mrb[26].mxu0  ;;  %v1354_v18 = vpop.f32.mrb[26].mxu1  ;;  %1067 = vst [vmem:[%s1718_s30 + $0x30] sm:$0xff] (!%p1246_p13), %v1035_v0  ;;  %1068 = vst [vmem:[%s1718_s30 + $0x38] sm:$0xff] (!%p1246_p13), %v1036_v1 }
 0x16d   : > { %v1307_v20 = vpop.f32.mrb[27].mxu0  ;;  %v1355_v22 = vpop.f32.mrb[27].mxu1  ;;  %1069 = vst [vmem:[%s1718_s30 + $0x40] sm:$0xff] (!%p1246_p13), %v1037_v5  ;;  %1070 = vst [vmem:[%s1718_s30 + $0x48] sm:$0xff] (!%p1246_p13), %v1038_v6 }
 0x16e   : > { %v934_v23 = vadd.f32 %v1305_v15, %v421_v11  ;;  %v950_v24 = vadd.f32 %v1353_v16, %v437_v13  ;;  %v1308_v25 = vadd.f32 %v1307_v20, %v1306_v17  ;;  %v1356_v26 = vadd.f32 %v1355_v22, %v1354_v18  ;;  %v1006_v16 = vld [vmem:[#allocation2 + $0x80] sm:$0xff] (!%p1246_p13)  ;;  %v1007_v20 = vld [vmem:[#allocation2 + $0x88] sm:$0xff] (!%p1246_p13)  ;;  %v1009_v22 = vld [vmem:[#allocation2 + $0x98] sm:$0xff] (!%p1246_p13) }
 0x16f   : > { %v1000_v4 = vld [vmem:[#allocation2 + $0x50] sm:$0xff] (!%p1246_p13) }
 0x170   : > { %966 = vst [vmem:[#allocation2 + $0x60] sm:$0xff] %v934_v23  ;;  %982 = vst [vmem:[#allocation2 + $0xe0] sm:$0xff] %v950_v24  ;;  %v935_v27 = vadd.f32 %v1308_v25, %v422_v19  ;;  %v951_v28 = vadd.f32 %v1356_v26, %v438_v21  ;;  %v1039_v7 = vadd.f32 (!%p1246_p13), %v1775_v50, %v1000_v4  ;;  %v1008_v21 = vld [vmem:[#allocation2 + $0x90] sm:$0xff] (!%p1246_p13)  ;;  %v1010_v26 = vld [vmem:[#allocation2 + $0xa0] sm:$0xff] (!%p1246_p13) }
 0x171   : > { %v1001_v8 = vld [vmem:[#allocation2 + $0x58] sm:$0xff] (!%p1246_p13)  ;;  %v1045_v19 = vadd.f32 (!%p1246_p13), %v1775_v50, %v1006_v16  ;;  %v1046_v23 = vadd.f32 (!%p1246_p13), %v1775_v50, %v1007_v20  ;;  %v1047_v24 = vadd.f32 (!%p1246_p13), %v1775_v50, %v1008_v21  ;;  %v1048_v25 = vadd.f32 (!%p1246_p13), %v1775_v50, %v1009_v22 }
 0x172   : > { %967 = vst [vmem:[#allocation2 + $0x68] sm:$0xff] %v935_v27  ;;  %983 = vst [vmem:[#allocation2 + $0xe8] sm:$0xff] %v951_v28  ;;  %v1309_v29 = vpop.f32.mrb[28].mxu0  ;;  %v1357_v30 = vpop.f32.mrb[28].mxu1  ;;  %v1040_v11 = vadd.f32 (!%p1246_p13), %v1775_v50, %v1001_v8  ;;  %v1011_v27 = vld [vmem:[#allocation2 + $0xa8] sm:$0xff] (!%p1246_p13)  ;;  %v1012_v28 = vld [vmem:[#allocation2 + $0xb0] sm:$0xff] (!%p1246_p13) }
 0x173   : > { %v1310_v32 = vpop.f32.mrb[29].mxu0  ;;  %v1358_v34 = vpop.f32.mrb[29].mxu1  ;;  %1071 = vst [vmem:[%s1718_s30 + $0x50] sm:$0xff] (!%p1246_p13), %v1039_v7  ;;  %1077 = vst [vmem:[%s1718_s30 + $0x80] sm:$0xff] (!%p1246_p13), %v1045_v19 }
 0x174   : > { %v1311_v35 = vadd.f32 %v1310_v32, %v1309_v29  ;;  %v1359_v36 = vadd.f32 %v1358_v34, %v1357_v30  ;;  %v1312_v37 = vpop.f32.mrb[30].mxu0  ;;  %v1360_v38 = vpop.f32.mrb[30].mxu1  ;;  %989 = sbr.rel (%p1246_p13) target bundleno = 390 (0x186), region = 78  ;;  %1072 = vst [vmem:[%s1718_s30 + $0x58] sm:$0xff] (!%p1246_p13), %v1040_v11  ;;  %v1049_v29 = vadd.f32 (!%p1246_p13), %v1775_v50, %v1010_v26  ;;  %v1050_v30 = vadd.f32 (!%p1246_p13), %v1775_v50, %v1011_v27  ;;  %v1013_v32 = vld [vmem:[#allocation2 + $0xb8] sm:$0xff] (!%p1246_p13)  ;;  %v1015_v34 = vld [vmem:[#allocation2 + $0xc8] sm:$0xff] (!%p1246_p13) }
 0x175   : > { %v1313_v40 = vpop.f32.mrb[31].mxu0  ;;  %v1361_v42 = vpop.f32.mrb[31].mxu1  ;;  %1078 = vst [vmem:[%s1718_s30 + $0x88] sm:$0xff] (!%p1246_p13), %v1046_v23  ;;  %1079 = vst [vmem:[%s1718_s30 + $0x90] sm:$0xff] (!%p1246_p13), %v1047_v24 }
 0x176   : > { %v936_v43 = vadd.f32 %v1311_v35, %v423_v31  ;;  %v952_v44 = vadd.f32 %v1359_v36, %v439_v33  ;;  %v1314_v45 = vadd.f32 %v1313_v40, %v1312_v37  ;;  %v1362_v46 = vadd.f32 %v1361_v42, %v1360_v38  ;;  %v1014_v33 = vld [vmem:[#allocation2 + $0xc0] sm:$0xff] (!%p1246_p13)  ;;  %1080 = vst [vmem:[%s1718_s30 + $0x98] sm:$0xff] (!%p1246_p13), %v1048_v25  ;;  %v1016_v38 = vld [vmem:[#allocation2 + $0xd0] sm:$0xff] (!%p1246_p13) }
 0x177   : > { %v1002_v9 = vld [vmem:[#allocation2 + $0x60] sm:$0xff] (!%p1246_p13)  ;;  %v1051_v31 = vadd.f32 (!%p1246_p13), %v1775_v50, %v1012_v28  ;;  %v1052_v35 = vadd.f32 (!%p1246_p13), %v1775_v50, %v1013_v32  ;;  %v1053_v36 = vadd.f32 (!%p1246_p13), %v1775_v50, %v1014_v33  ;;  %v1054_v37 = vadd.f32 (!%p1246_p13), %v1775_v50, %v1015_v34  ;;  %1081 = vst [vmem:[%s1718_s30 + $0xa0] sm:$0xff] (!%p1246_p13), %v1049_v29 }
 0x178   : > { %968 = vst [vmem:[#allocation2 + $0x70] sm:$0xff] %v936_v43  ;;  %984 = vst [vmem:[#allocation2 + $0xf0] sm:$0xff] %v952_v44  ;;  %v937_v47 = vadd.f32 %v1314_v45, %v424_v39  ;;  %v953_v48 = vadd.f32 %v1362_v46, %v440_v41  ;;  %v1041_v12 = vadd.f32 (!%p1246_p13), %v1775_v50, %v1002_v9  ;;  %v1017_v39 = vld [vmem:[#allocation2 + $0xd8] sm:$0xff] (!%p1246_p13)  ;;  %v1018_v40 = vld [vmem:[#allocation2 + $0xe0] sm:$0xff] (!%p1246_p13) }
 0x179   : > { %v1003_v10 = vld [vmem:[#allocation2 + $0x68] sm:$0xff] (!%p1246_p13)  ;;  %1082 = vst [vmem:[%s1718_s30 + $0xa8] sm:$0xff] (!%p1246_p13), %v1050_v30  ;;  %1083 = vst [vmem:[%s1718_s30 + $0xb0] sm:$0xff] (!%p1246_p13), %v1051_v31  ;;  %v1055_v41 = vadd.f32 (!%p1246_p13), %v1775_v50, %v1016_v38  ;;  %v1056_v42 = vadd.f32 (!%p1246_p13), %v1775_v50, %v1017_v39  ;;  %v1057_v43 = vadd.f32 (!%p1246_p13), %v1775_v50, %v1018_v40 }
 0x17a   : > { %969 = vst [vmem:[#allocation2 + $0x78] sm:$0xff] %v937_v47  ;;  %985 = vst [vmem:[#allocation2 + $0xf8] sm:$0xff] %v953_v48  ;;  %v1042_v13 = vadd.f32 (!%p1246_p13), %v1775_v50, %v1003_v10  ;;  %v1019_v44 = vld [vmem:[#allocation2 + $0xe8] sm:$0xff] (!%p1246_p13) }
 0x17b   : > { %1073 = vst [vmem:[%s1718_s30 + $0x60] sm:$0xff] %v1041_v12  ;;  %1084 = vst [vmem:[%s1718_s30 + $0xb8] sm:$0xff] %v1052_v35  ;;  %v1058_v47 = vadd.f32 %v1775_v50, %v1019_v44 }
 0x17c   : > { %1074 = vst [vmem:[%s1718_s30 + $0x68] sm:$0xff] %v1042_v13  ;;  %1085 = vst [vmem:[%s1718_s30 + $0xc0] sm:$0xff] %v1053_v36 }
 0x17d   : > { %1086 = vst [vmem:[%s1718_s30 + $0xc8] sm:$0xff] %v1054_v37  ;;  %1087 = vst [vmem:[%s1718_s30 + $0xd0] sm:$0xff] %v1055_v41 }
 0x17e   : > { %1088 = vst [vmem:[%s1718_s30 + $0xd8] sm:$0xff] %v1056_v42  ;;  %1089 = vst [vmem:[%s1718_s30 + $0xe0] sm:$0xff] %v1057_v43 }
 0x17f   : > { %v1004_v14 = vld [vmem:[#allocation2 + $0x70] sm:$0xff]  ;;  %1090 = vst [vmem:[%s1718_s30 + $0xe8] sm:$0xff] %v1058_v47 }
 0x180   : > { %v1043_v17 = vadd.f32 %v1775_v50, %v1004_v14  ;;  %v1020_v45 = vld [vmem:[#allocation2 + $0xf0] sm:$0xff] }
 0x181   : > { %v1005_v15 = vld [vmem:[#allocation2 + $0x78] sm:$0xff]  ;;  %v1059_v48 = vadd.f32 %v1775_v50, %v1020_v45 }
 0x182   : > { %v1044_v18 = vadd.f32 %v1775_v50, %v1005_v15  ;;  %1075 = vst [vmem:[%s1718_s30 + $0x70] sm:$0xff] %v1043_v17  ;;  %v1021_v46 = vld [vmem:[#allocation2 + $0xf8] sm:$0xff] }
 0x183   : > { %v1060_v49 = vadd.f32 %v1775_v50, %v1021_v46  ;;  %1091 = vst [vmem:[%s1718_s30 + $0xf0] sm:$0xff] %v1059_v48 }
 0x184   : > { %1076 = vst [vmem:[%s1718_s30 + $0x78] sm:$0xff] %v1044_v18 }
 0x185   : > { %1092 = vst [vmem:[%s1718_s30 + $0xf8] sm:$0xff] %v1060_v49 }
 0x186 PF: > { %s13_s18 = sadd.s32 1, %s1554_s18   ;;  %s1866_s12 = smov %s1534_s13 }
 0x187   : > { %p10_p0 = scmp.ge.s32.totalorder %s13_s18, 6   ;;  %s1867_s13 = smov %s1628_s25 }
 0x188   : > { %s1868_s14 = smov %s1546_s16  ;;  %s1869_s15 = smov %s1550_s17 }
 0x189   : > { %s1870_s16 = smov %s1873_s19  ;;  %s1871_s17 = smov %s1877_s20 }
 0x18a   :  { %12 = sbr.rel (!%p10_p0) target bundleno = 4 (0x4), region = 116 }

// kernel: gcn_forward.3
= control target key start
LH: loop header
LB: loop body
LE: loop exit
PB: predicated region body
PF: predicated region fallthrough
CT: control target
= control target key end

     0   :  { %8 = vsyncpa [#allocation5], 0  ;;  %s2060_s0 = inlined_call_operand.vmem [shape: bf16[512,512], index: 0, kind: input, shape index: {}]   ;;  %s2061_s1 = inlined_call_operand.vmem [shape: bf16[512,128], index: 1, kind: input, shape index: {}]   ;;  %s2062_s2 = inlined_call_operand.vmem [shape: f32[1,128], index: 2, kind: input, shape index: {}]   ;;  %s2063_s3 = inlined_call_operand.hbm [shape: f32[512,128], index: 3, kind: output, shape index: {}]  }
   0x1   :  { %10 = vsyncpa [#allocation5 + $0x1], 0  ;;  %s1689_s12 = smov 0   ;;  %s1691_s13 = smov 0  }
   0x2   :  { %s1693_s14 = smov 0   ;;  %s1695_s15 = smov 0  }
   0x3   :  { %s1697_s16 = smov 0   ;;  %s1699_s17 = smov 0  }
   0x4   :  { %s1701_s18 = smov 0   ;;  %s1703_s19 = smov 0  }
   0x5   :  { %s1705_s20 = smov 0   ;;  %s1707_s21 = smov 0  }
   0x6 LB: > { %s1199_s22 = sadd.s32 4294967295, %s1663_s21   ;;  %s1200_s23 = sadd.s32 4294967294, %s1663_s21   ;;  %s1663_s21 = sphi %s1707_s21, %s16_s21   ;;  %s1659_s20 = sphi %s1705_s20, %s2075_s20   ;;  %s1655_s19 = sphi %s1703_s19, %s2074_s19   ;;  %s1651_s18 = sphi %s1701_s18, %s2073_s18   ;;  %s1647_s17 = sphi %s1699_s17, %s2072_s17   ;;  %s1643_s16 = sphi %s1697_s16, %s2071_s16   ;;  %s1639_s15 = sphi %s1695_s15, %s2070_s15   ;;  %s1635_s14 = sphi %s1693_s14, %s2069_s14   ;;  %s1631_s13 = sphi %s1691_s13, %s2068_s13   ;;  %s1627_s12 = sphi %s1689_s12, %s2067_s12  }
   0x7   : > { %s25_s24 = sadd.s32 1, %s1655_s19  ;;  %s28_s25 = sadd.s32 1, %s1659_s20 }
   0x8   : > { %p26_p0 = scmp.ge.s32.totalorder %s25_s24, 2  ;;  %s37_s26 = sadd.s32 1, %s1643_s16 }
   0x9   : > { %p44_p1 = scmp.ne.s32.totalorder %s1643_s16, %s1639_s15  ;;  %p45_p2 = scmp.eq.s32.totalorder %s1663_s21, 0 }
   0xa   : > { %s2077_s24 = smov (%p26_p0, %s25_s24), 0  ;;  %s2079_s25 = smov (!%p26_p0, %s28_s25), %s1659_s20 }
   0xb   : > { %s33_s27 = ssub.s32 %s1655_s19, %s2077_s24  ;;  %p1752_p3 = por %p45_p2, %p44_p1 }
   0xc   : > { %p30_p4 = scmp.ge.s32.totalorder %s2079_s25, 2  ;;  %s110_s29 = sadd.s32 1, %s1635_s14 }
   0xd   : > { %p120_p5 = scmp.ne.s32.totalorder %s1635_s14, %s1631_s13  ;;  %p121_p6 = scmp.eq.s32.totalorder %s1199_s22, 3 }
   0xe   : > { %s2081_s25 = smov (%p30_p4, %s2079_s25), 0  ;;  %p126_p8 = scmp.ne.s32.totalorder %s1631_s13, %s1627_s12 }
   0xf   : > { %p1761_p7 = por %p121_p6, %p120_p5  ;;  %s32_s4 = ssub.s32 %s1659_s20, %s2081_s25 }
  0x10   : > { %p127_p9 = scmp.eq.s32.totalorder %s1200_s23, 3  ;;  %s34_s5 = sor.u32 %s33_s27, %s32_s4 }
  0x11   : > { %p108_p10 = scmp.eq.s32.totalorder %s32_s4, 0  ;;  %p35_p11 = scmp.eq.s32.totalorder %s34_s5, 0 }
  0x12   : > { %p1769_p12 = por %p127_p9, %p126_p8  ;;  %p1202_p13 = scmp.ge.s32.totalorder %s1663_s21, 4 }
  0x13   : > { %s1774_s7 = scalar_select %p108_p10, %s1635_s14, %s110_s29  }
  0x14   : > { %s1777_s8 = scalar_select %p35_p11, %s1643_s16, %s37_s26  }
  0x15   : > { %146 = sbr.rel (%p1202_p13) target bundleno = 51 (0x33), region = 20 }
  0x1c   : > { %149 = sbr.rel (!%p1752_p3) target bundleno = 51 (0x33), region = 24  ;;  %s151_s9 = sand.u32 (%p1752_p3), 1, %s1643_s16  }
  0x1d   : > { %s1205_s10 = sshll.u32 (%p1752_p3), %s1655_s19, 1  ;;  %s1203_s11 = sshll.u32 (%p1752_p3), %s151_s9, 8 }
  0x1e   : > { %s1269_s22 = sshll.u32 (%p1752_p3), %s1659_s20, 7  ;;  %s1793_s28 = scalar_lea.vmem (%p1752_p3), [#allocation3], %s1203_s11 }
  0x1f   : > { %s157_s23 = sadd.s32 (%p1752_p3), %s1269_s22, %s1205_s10 }
  0x20   : > { %s1207_s27 = sshll.u32 (%p1752_p3), %s157_s23, 2 }
  0x21   : > { %s1788_s26 = scalar_lea.vmem (%p1752_p3), %s2060_s0, %s1207_s27 }
  0x22   : > { %v249_v0 = vld [vmem:[%s1788_s26] sm:$0xff] (%p1752_p3)  ;;  %v251_v1 = vld [vmem:[%s1788_s26 + $0x10] sm:$0xff] (%p1752_p3) }
  0x23   : > { %v253_v2 = vld [vmem:[%s1788_s26 + $0x20] sm:$0xff]  ;;  %250 = vst [vmem:[%s1793_s28] sm:$0xff] %v249_v0  ;;  %252 = vst [vmem:[%s1793_s28 + $0x8] sm:$0xff] %v251_v1  ;;  %v255_v3 = vld [vmem:[%s1788_s26 + $0x30] sm:$0xff] }
  0x24   : > { %254 = vst [vmem:[%s1793_s28 + $0x10] sm:$0xff] %v253_v2  ;;  %v257_v4 = vld [vmem:[%s1788_s26 + $0x40] sm:$0xff]  ;;  %v259_v5 = vld [vmem:[%s1788_s26 + $0x50] sm:$0xff]  ;;  %256 = vst [vmem:[%s1793_s28 + $0x18] sm:$0xff] %v255_v3 }
  0x25   : > { %258 = vst [vmem:[%s1793_s28 + $0x20] sm:$0xff] %v257_v4  ;;  %260 = vst [vmem:[%s1793_s28 + $0x28] sm:$0xff] %v259_v5  ;;  %v261_v6 = vld [vmem:[%s1788_s26 + $0x60] sm:$0xff]  ;;  %v263_v7 = vld [vmem:[%s1788_s26 + $0x70] sm:$0xff] }
  0x26   : > { %v265_v8 = vld [vmem:[%s1788_s26 + $0x80] sm:$0xff]  ;;  %262 = vst [vmem:[%s1793_s28 + $0x30] sm:$0xff] %v261_v6  ;;  %264 = vst [vmem:[%s1793_s28 + $0x38] sm:$0xff] %v263_v7  ;;  %v267_v9 = vld [vmem:[%s1788_s26 + $0x90] sm:$0xff] }
  0x27   : > { %266 = vst [vmem:[%s1793_s28 + $0x40] sm:$0xff] %v265_v8  ;;  %v269_v10 = vld [vmem:[%s1788_s26 + $0xa0] sm:$0xff]  ;;  %v271_v11 = vld [vmem:[%s1788_s26 + $0xb0] sm:$0xff]  ;;  %268 = vst [vmem:[%s1793_s28 + $0x48] sm:$0xff] %v267_v9 }
  0x28   : > { %270 = vst [vmem:[%s1793_s28 + $0x50] sm:$0xff] %v269_v10  ;;  %272 = vst [vmem:[%s1793_s28 + $0x58] sm:$0xff] %v271_v11  ;;  %v273_v12 = vld [vmem:[%s1788_s26 + $0xc0] sm:$0xff]  ;;  %v275_v13 = vld [vmem:[%s1788_s26 + $0xd0] sm:$0xff] }
  0x29   : > { %v277_v14 = vld [vmem:[%s1788_s26 + $0xe0] sm:$0xff]  ;;  %274 = vst [vmem:[%s1793_s28 + $0x60] sm:$0xff] %v273_v12  ;;  %276 = vst [vmem:[%s1793_s28 + $0x68] sm:$0xff] %v275_v13  ;;  %v279_v15 = vld [vmem:[%s1788_s26 + $0xf0] sm:$0xff] }
  0x2a   : > { %278 = vst [vmem:[%s1793_s28 + $0x70] sm:$0xff] %v277_v14  ;;  %v281_v16 = vld [vmem:[%s1788_s26 + $0x100] sm:$0xff]  ;;  %v283_v17 = vld [vmem:[%s1788_s26 + $0x110] sm:$0xff]  ;;  %280 = vst [vmem:[%s1793_s28 + $0x78] sm:$0xff] %v279_v15 }
  0x2b   : > { %282 = vst [vmem:[%s1793_s28 + $0x80] sm:$0xff] %v281_v16  ;;  %284 = vst [vmem:[%s1793_s28 + $0x88] sm:$0xff] %v283_v17  ;;  %v285_v18 = vld [vmem:[%s1788_s26 + $0x120] sm:$0xff]  ;;  %v287_v19 = vld [vmem:[%s1788_s26 + $0x130] sm:$0xff] }
  0x2c   : > { %v289_v20 = vld [vmem:[%s1788_s26 + $0x140] sm:$0xff]  ;;  %286 = vst [vmem:[%s1793_s28 + $0x90] sm:$0xff] %v285_v18  ;;  %288 = vst [vmem:[%s1793_s28 + $0x98] sm:$0xff] %v287_v19  ;;  %v291_v21 = vld [vmem:[%s1788_s26 + $0x150] sm:$0xff] }
  0x2d   : > { %290 = vst [vmem:[%s1793_s28 + $0xa0] sm:$0xff] %v289_v20  ;;  %v293_v22 = vld [vmem:[%s1788_s26 + $0x160] sm:$0xff]  ;;  %v295_v23 = vld [vmem:[%s1788_s26 + $0x170] sm:$0xff]  ;;  %292 = vst [vmem:[%s1793_s28 + $0xa8] sm:$0xff] %v291_v21 }
  0x2e   : > { %294 = vst [vmem:[%s1793_s28 + $0xb0] sm:$0xff] %v293_v22  ;;  %296 = vst [vmem:[%s1793_s28 + $0xb8] sm:$0xff] %v295_v23  ;;  %v297_v24 = vld [vmem:[%s1788_s26 + $0x180] sm:$0xff]  ;;  %v299_v25 = vld [vmem:[%s1788_s26 + $0x190] sm:$0xff] }
  0x2f   : > { %v301_v26 = vld [vmem:[%s1788_s26 + $0x1a0] sm:$0xff]  ;;  %298 = vst [vmem:[%s1793_s28 + $0xc0] sm:$0xff] %v297_v24  ;;  %300 = vst [vmem:[%s1793_s28 + $0xc8] sm:$0xff] %v299_v25  ;;  %v303_v27 = vld [vmem:[%s1788_s26 + $0x1b0] sm:$0xff] }
  0x30   : > { %302 = vst [vmem:[%s1793_s28 + $0xd0] sm:$0xff] %v301_v26  ;;  %v305_v28 = vld [vmem:[%s1788_s26 + $0x1c0] sm:$0xff]  ;;  %v307_v29 = vld [vmem:[%s1788_s26 + $0x1d0] sm:$0xff]  ;;  %304 = vst [vmem:[%s1793_s28 + $0xd8] sm:$0xff] %v303_v27 }
  0x31   : > { %306 = vst [vmem:[%s1793_s28 + $0xe0] sm:$0xff] %v305_v28  ;;  %308 = vst [vmem:[%s1793_s28 + $0xe8] sm:$0xff] %v307_v29  ;;  %v309_v30 = vld [vmem:[%s1788_s26 + $0x1e0] sm:$0xff]  ;;  %v311_v31 = vld [vmem:[%s1788_s26 + $0x1f0] sm:$0xff] }
  0x32   : > { %310 = vst [vmem:[%s1793_s28 + $0xf0] sm:$0xff] %v309_v30  ;;  %312 = vst [vmem:[%s1793_s28 + $0xf8] sm:$0xff] %v311_v31 }
  0x33 PF: > { %p1208_p0 = scmp.ge.s32.totalorder %s1663_s21, 1  ;;  %p326_p1 = scmp.lt.s32.totalorder %s1663_s21, 5 }
  0x35   : > { %p327_p2 = pnand %p1208_p0, %p326_p1 }
  0x36   : > { %s333_s5 = sand.u32 (!%p327_p2), 1, %s1639_s15   ;;  %s358_s9 = sand.u32 (!%p327_p2), 1, %s1631_s13  }
  0x37   : > { %330 = sbr.rel (%p327_p2) target bundleno = 425 (0x1a9), region = 66  ;;  %s1209_s10 = sshll.u32 (!%p327_p2), %s333_s5, 8 }
  0x38   : > { %s1210_s11 = sshll.u32 (!%p327_p2), %s358_s9, 8  ;;  %s1211_s22 = sshll.u32 (!%p327_p2), %s1647_s17, 5 }
  0x39   : > { %p364_p3 = scmp.lt.s32.totalorder (!%p327_p2), %s1211_s22, 63  ;;  %s1868_s26 = scalar_lea.vmem (!%p327_p2), [#allocation3], %s1209_s10 }
  0x3a   : > { %s1870_s28 = scalar_lea.vmem (!%p327_p2), [#allocation4], %s1210_s11  ;;  %p1213_p4 = scmp.ne.s32.totalorder (!%p327_p2), %s1647_s17, 0 }
  0x3e   : > { %s2083_s22 = smov (!%p364_p3, %s1211_s22), 63  ;;  %374 = sbr.rel (%p1213_p4) target bundleno = 80 (0x50), region = 74 }
  0x3f   : > { %s1212_s23 = sshll.u32 %s2083_s22, 2  ;;  %v1665_v32 = vmov (!%p1213_p4), 0.0  }
  0x40   : > { %s1866_s29 = scalar_lea.vmem %s2061_s1, %s1212_s23  ;;  %375 = vst [vmem:[#allocation2] sm:$0xff] (!%p1213_p4), %v1665_v32  ;;  %376 = vst [vmem:[#allocation2 + $0x8] sm:$0xff] (!%p1213_p4), %v1665_v32 }
  0x41   : > { %377 = vst [vmem:[#allocation2 + $0x10] sm:$0xff] (!%p1213_p4), %v1665_v32  ;;  %378 = vst [vmem:[#allocation2 + $0x18] sm:$0xff] (!%p1213_p4), %v1665_v32 }
  0x42   : > { %379 = vst [vmem:[#allocation2 + $0x20] sm:$0xff] (!%p1213_p4), %v1665_v32  ;;  %380 = vst [vmem:[#allocation2 + $0x28] sm:$0xff] (!%p1213_p4), %v1665_v32 }
  0x43   : > { %381 = vst [vmem:[#allocation2 + $0x30] sm:$0xff] (!%p1213_p4), %v1665_v32  ;;  %382 = vst [vmem:[#allocation2 + $0x38] sm:$0xff] (!%p1213_p4), %v1665_v32 }
  0x44   : > { %383 = vst [vmem:[#allocation2 + $0x40] sm:$0xff] (!%p1213_p4), %v1665_v32  ;;  %384 = vst [vmem:[#allocation2 + $0x48] sm:$0xff] (!%p1213_p4), %v1665_v32 }
  0x45   : > { %385 = vst [vmem:[#allocation2 + $0x50] sm:$0xff] %v1665_v32  ;;  %386 = vst [vmem:[#allocation2 + $0x58] sm:$0xff] %v1665_v32 }
  0x46   : > { %387 = vst [vmem:[#allocation2 + $0x60] sm:$0xff] %v1665_v32  ;;  %388 = vst [vmem:[#allocation2 + $0x68] sm:$0xff] %v1665_v32 }
  0x47   : > { %389 = vst [vmem:[#allocation2 + $0x70] sm:$0xff] %v1665_v32  ;;  %390 = vst [vmem:[#allocation2 + $0x78] sm:$0xff] %v1665_v32 }
  0x48   : > { %391 = vst [vmem:[#allocation2 + $0x80] sm:$0xff] %v1665_v32  ;;  %392 = vst [vmem:[#allocation2 + $0x88] sm:$0xff] %v1665_v32 }
  0x49   : > { %393 = vst [vmem:[#allocation2 + $0x90] sm:$0xff] %v1665_v32  ;;  %394 = vst [vmem:[#allocation2 + $0x98] sm:$0xff] %v1665_v32 }
  0x4a   : > { %395 = vst [vmem:[#allocation2 + $0xa0] sm:$0xff] %v1665_v32  ;;  %396 = vst [vmem:[#allocation2 + $0xa8] sm:$0xff] %v1665_v32 }
  0x4b   : > { %397 = vst [vmem:[#allocation2 + $0xb0] sm:$0xff] %v1665_v32  ;;  %398 = vst [vmem:[#allocation2 + $0xb8] sm:$0xff] %v1665_v32 }
  0x4c   : > { %399 = vst [vmem:[#allocation2 + $0xc0] sm:$0xff] %v1665_v32  ;;  %400 = vst [vmem:[#allocation2 + $0xc8] sm:$0xff] %v1665_v32 }
  0x4d   : > { %401 = vst [vmem:[#allocation2 + $0xd0] sm:$0xff] %v1665_v32  ;;  %402 = vst [vmem:[#allocation2 + $0xd8] sm:$0xff] %v1665_v32 }
  0x4e   : > { %403 = vst [vmem:[#allocation2 + $0xe0] sm:$0xff] %v1665_v32  ;;  %404 = vst [vmem:[#allocation2 + $0xe8] sm:$0xff] %v1665_v32 }
  0x4f   : > { %405 = vst [vmem:[#allocation2 + $0xf0] sm:$0xff] %v1665_v32  ;;  %406 = vst [vmem:[#allocation2 + $0xf8] sm:$0xff] %v1665_v32 }
  0x50 PF: > { %v1489_v33 = vld [vmem:[%s1866_s29 + $0x40] sm:$0xff]   ;;  %v1491_v35 = vld [vmem:[%s1866_s29 + $0x48] sm:$0xff]   ;;  %v1493_v37 = vld [vmem:[%s1866_s29 + $0x50] sm:$0xff]   ;;  %p1262_p5 = scmp.ne.s32.totalorder %s1647_s17, 1 }
  0x51   : > { %v1490_v34 = vld [vmem:[%s1866_s29] sm:$0xff]   ;;  %1271 = vmatprep.subr.bf16.mxu0 %v1489_v33  ;;  %1383 = vmatprep.subr.bf16.mxu1 %v1489_v33  ;;  %v1492_v36 = vld [vmem:[%s1866_s29 + $0x8] sm:$0xff]   ;;  %v1494_v38 = vld [vmem:[%s1866_s29 + $0x10] sm:$0xff]  }
  0x52   : > { %1272 = vmatpush3.bf16.msra.mxu0 %v1490_v34  ;;  %1391 = vmatpush3.bf16.msra.mxu1 %v1490_v34  ;;  %v1495_v39 = vld [vmem:[%s1866_s29 + $0x58] sm:$0xff]   ;;  %v1497_v41 = vld [vmem:[%s1866_s29 + $0x60] sm:$0xff]   ;;  %v1499_v43 = vld [vmem:[%s1866_s29 + $0x68] sm:$0xff]  }
  0x53   : > { %1273 = vmatprep.subr.bf16.mxu0 %v1491_v35  ;;  %1384 = vmatprep.subr.bf16.mxu1 %v1491_v35  ;;  %v1496_v40 = vld [vmem:[%s1866_s29 + $0x18] sm:$0xff]   ;;  %v1498_v42 = vld [vmem:[%s1866_s29 + $0x20] sm:$0xff]   ;;  %v1500_v46 = vld [vmem:[%s1866_s29 + $0x28] sm:$0xff]  }
  0x54   : > { %v1507_v44 = vld [vmem:[%s1868_s26 + $0x4] ss:$8 sps:$4 sm:$0xff]   ;;  %v1501_v47 = vld [vmem:[%s1866_s29 + $0x70] sm:$0xff]   ;;  %v1503_v49 = vld [vmem:[%s1866_s29 + $0x78] sm:$0xff]  }
  0x55   : > { %v1510_v45 = vld [vmem:[%s1868_s26 + $0x84] ss:$8 sps:$4 sm:$0xff]   ;;  %791 = vmatprep.mubr.bf16.mxu0 %v1507_v44  ;;  %v1502_v48 = vld [vmem:[%s1866_s29 + $0x30] sm:$0xff]   ;;  %v1504_v50 = vld [vmem:[%s1866_s29 + $0x38] sm:$0xff]  }
  0x56   : > { %1274 = vmatpush3.bf16.msra.mxu0 %v1492_v36  ;;  %1392 = vmatpush3.bf16.msra.mxu1 %v1492_v36  ;;  %v1505_v51 = vld [vmem:[%s1868_s26] ss:$8 sps:$4 sm:$0xff]   ;;  %v1511_v53 = vld [vmem:[%s1868_s26 + $0x14] ss:$8 sps:$4 sm:$0xff]   ;;  %v1515_v55 = vld [vmem:[%s1868_s26 + $0x10] ss:$8 sps:$4 sm:$0xff]  }
  0x57   : > { %1275 = vmatprep.subr.bf16.mxu0 %v1493_v37  ;;  %1385 = vmatprep.subr.bf16.mxu1 %v1493_v37  ;;  %v1508_v52 = vld [vmem:[%s1868_s26 + $0x80] ss:$8 sps:$4 sm:$0xff]   ;;  %v1513_v54 = vld [vmem:[%s1868_s26 + $0x94] ss:$8 sps:$4 sm:$0xff]   ;;  %v1516_v56 = vld [vmem:[%s1868_s26 + $0x90] ss:$8 sps:$4 sm:$0xff]  }
  0x58   : > { %855 = vmatprep.mubr.bf16.mxu1 %v1510_v45  ;;  %v1517_v57 = vld [vmem:[%s1868_s26 + $0x24] ss:$8 sps:$4 sm:$0xff]   ;;  %v1521_v59 = vld [vmem:[%s1868_s26 + $0x20] ss:$8 sps:$4 sm:$0xff]   ;;  %v1523_v61 = vld [vmem:[%s1868_s26 + $0x34] ss:$8 sps:$4 sm:$0xff]  }
  0x59   : > { %v1519_v58 = vld [vmem:[%s1868_s26 + $0xa4] ss:$8 sps:$4 sm:$0xff]   ;;  %v1522_v60 = vld [vmem:[%s1868_s26 + $0xa0] ss:$8 sps:$4 sm:$0xff]   ;;  %v1525_v62 = vld [vmem:[%s1868_s26 + $0xb4] ss:$8 sps:$4 sm:$0xff]  }
  0x5a   : > { %1276 = vmatpush3.bf16.msra.mxu0 %v1494_v38  ;;  %1393 = vmatpush3.bf16.msra.mxu1 %v1494_v38  ;;  %v1527_v63 = vld [vmem:[%s1868_s26 + $0x30] ss:$8 sps:$4 sm:$0xff]   ;;  %v1529_v1 = vld [vmem:[%s1868_s26 + $0x44] ss:$8 sps:$4 sm:$0xff]   ;;  %v1533_v3 = vld [vmem:[%s1868_s26 + $0x40] ss:$8 sps:$4 sm:$0xff]  }
  0x5b   : > { %1277 = vmatprep.subr.bf16.mxu0 %v1495_v39  ;;  %1386 = vmatprep.subr.bf16.mxu1 %v1495_v39  ;;  %v1528_v0 = vld [vmem:[%s1868_s26 + $0xb0] ss:$8 sps:$4 sm:$0xff]   ;;  %v1531_v2 = vld [vmem:[%s1868_s26 + $0xc4] ss:$8 sps:$4 sm:$0xff]   ;;  %v1534_v4 = vld [vmem:[%s1868_s26 + $0xc0] ss:$8 sps:$4 sm:$0xff]  }
  0x5c   : > { %v1535_v5 = vld [vmem:[%s1868_s26 + $0x54] ss:$8 sps:$4 sm:$0xff]   ;;  %v1539_v7 = vld [vmem:[%s1868_s26 + $0x50] ss:$8 sps:$4 sm:$0xff]   ;;  %v1541_v9 = vld [vmem:[%s1868_s26 + $0x64] ss:$8 sps:$4 sm:$0xff]  }
  0x5d   : > { %v1537_v6 = vld [vmem:[%s1868_s26 + $0xd4] ss:$8 sps:$4 sm:$0xff]   ;;  %v1540_v8 = vld [vmem:[%s1868_s26 + $0xd0] ss:$8 sps:$4 sm:$0xff]   ;;  %v1543_v10 = vld [vmem:[%s1868_s26 + $0xe4] ss:$8 sps:$4 sm:$0xff]  }
  0x5e   : > { %1278 = vmatpush3.bf16.msra.mxu0 %v1496_v40  ;;  %1394 = vmatpush3.bf16.msra.mxu1 %v1496_v40  ;;  %v1545_v11 = vld [vmem:[%s1868_s26 + $0x60] ss:$8 sps:$4 sm:$0xff]   ;;  %v1547_v13 = vld [vmem:[%s1868_s26 + $0x74] ss:$8 sps:$4 sm:$0xff]   ;;  %v1551_v15 = vld [vmem:[%s1868_s26 + $0x70] ss:$8 sps:$4 sm:$0xff]  }
  0x5f   : > { %1279 = vmatprep.subr.bf16.mxu0 %v1497_v41  ;;  %1387 = vmatprep.subr.bf16.mxu1 %v1497_v41  ;;  %v1546_v12 = vld [vmem:[%s1868_s26 + $0xe0] ss:$8 sps:$4 sm:$0xff]   ;;  %v1549_v14 = vld [vmem:[%s1868_s26 + $0xf4] ss:$8 sps:$4 sm:$0xff]   ;;  %v1552_v16 = vld [vmem:[%s1868_s26 + $0xf0] ss:$8 sps:$4 sm:$0xff]  }
  0x60   : > { %v407_v19 = vld [vmem:[#allocation2] sm:$0xff]  ;;  %v408_v27 = vld [vmem:[#allocation2 + $0x8] sm:$0xff]  ;;  %v409_v39 = vld [vmem:[#allocation2 + $0x10] sm:$0xff] }
  0x61   : > { %v423_v21 = vld [vmem:[#allocation2 + $0x80] sm:$0xff]  ;;  %v424_v29 = vld [vmem:[#allocation2 + $0x88] sm:$0xff]  ;;  %v425_v41 = vld [vmem:[#allocation2 + $0x90] sm:$0xff] }
  0x62   : > { %1280 = vmatpush3.bf16.msra.mxu0 %v1498_v42  ;;  %1395 = vmatpush3.bf16.msra.mxu1 %v1498_v42 }
  0x63   : > { %1281 = vmatprep.subr.bf16.mxu0 %v1499_v43  ;;  %1388 = vmatprep.subr.bf16.mxu1 %v1499_v43 }
  0x66   : > { %1282 = vmatpush3.bf16.msra.mxu0 %v1500_v46  ;;  %1396 = vmatpush3.bf16.msra.mxu1 %v1500_v46 }
  0x67   : > { %1283 = vmatprep.subr.bf16.mxu0 %v1501_v47  ;;  %1389 = vmatprep.subr.bf16.mxu1 %v1501_v47  ;;  %v410_v47 = vld [vmem:[#allocation2 + $0x18] sm:$0xff] }
  0x6a   : > { %1284 = vmatpush3.bf16.msra.mxu0 %v1502_v48  ;;  %1397 = vmatpush3.bf16.msra.mxu1 %v1502_v48 }
  0x6b   : > { %1285 = vmatprep.subr.bf16.mxu0 %v1503_v49  ;;  %1390 = vmatprep.subr.bf16.mxu1 %v1503_v49  ;;  %v426_v49 = vld [vmem:[#allocation2 + $0x98] sm:$0xff] }
  0x6e   : > { %1286 = vmatpush3.bf16.msra.mxu0 %v1504_v50  ;;  %1398 = vmatpush3.bf16.msra.mxu1 %v1504_v50 }
  0x71   : > { %792 = vmatmul.mubr.bf16.vlgmr.msra.gmra.mrb[0].mxu0 %v1505_v51  ;;  %856 = vmatmul.mubr.bf16.vlgmr.msra.gmra.mrb[0].mxu1 %v1508_v52 }
  0x72   : > { %799 = vmatprep.mubr.bf16.mxu0 %v1511_v53  ;;  %863 = vmatprep.mubr.bf16.mxu1 %v1513_v54 }
  0x79   : > { %800 = vmatmul.mubr.bf16.gmra.mrb[4].mxu0 %v1515_v55  ;;  %864 = vmatmul.mubr.bf16.gmra.mrb[4].mxu1 %v1516_v56 }
  0x7a   : > { %807 = vmatprep.mubr.bf16.mxu0 %v1517_v57  ;;  %871 = vmatprep.mubr.bf16.mxu1 %v1519_v58 }
  0x81   : > { %808 = vmatmul.mubr.bf16.gmra.mrb[8].mxu0 %v1521_v59  ;;  %872 = vmatmul.mubr.bf16.gmra.mrb[8].mxu1 %v1522_v60  ;;  %v411_v59 = vld [vmem:[#allocation2 + $0x20] sm:$0xff] }
  0x82   : > { %815 = vmatprep.mubr.bf16.mxu0 %v1523_v61  ;;  %879 = vmatprep.mubr.bf16.mxu1 %v1525_v62  ;;  %v427_v61 = vld [vmem:[#allocation2 + $0xa0] sm:$0xff] }
  0x89   : > { %816 = vmatmul.mubr.bf16.gmra.mrb[12].mxu0 %v1527_v63  ;;  %880 = vmatmul.mubr.bf16.gmra.mrb[12].mxu1 %v1528_v0 }
  0x8a   : > { %823 = vmatprep.mubr.bf16.mxu0 %v1529_v1  ;;  %887 = vmatprep.mubr.bf16.mxu1 %v1531_v2 }
  0x91   : > { %824 = vmatmul.mubr.bf16.gmra.mrb[16].mxu0 %v1533_v3  ;;  %888 = vmatmul.mubr.bf16.gmra.mrb[16].mxu1 %v1534_v4  ;;  %v412_v3 = vld [vmem:[#allocation2 + $0x28] sm:$0xff] }
  0x92   : > { %831 = vmatprep.mubr.bf16.mxu0 %v1535_v5  ;;  %895 = vmatprep.mubr.bf16.mxu1 %v1537_v6  ;;  %v428_v5 = vld [vmem:[#allocation2 + $0xa8] sm:$0xff] }
  0x99   : > { %832 = vmatmul.mubr.bf16.gmra.mrb[20].mxu0 %v1539_v7  ;;  %896 = vmatmul.mubr.bf16.gmra.mrb[20].mxu1 %v1540_v8 }
  0x9a   : > { %839 = vmatprep.mubr.bf16.mxu0 %v1541_v9  ;;  %903 = vmatprep.mubr.bf16.mxu1 %v1543_v10 }
  0xa1   : > { %840 = vmatmul.mubr.bf16.gmra.mrb[24].mxu0 %v1545_v11  ;;  %904 = vmatmul.mubr.bf16.gmra.mrb[24].mxu1 %v1546_v12 }
  0xa2   : > { %847 = vmatprep.mubr.bf16.mxu0 %v1547_v13  ;;  %911 = vmatprep.mubr.bf16.mxu1 %v1549_v14 }
  0xa9   : > { %848 = vmatmul.mubr.bf16.gmra.mrb[28].mxu0 %v1551_v15  ;;  %912 = vmatmul.mubr.bf16.gmra.mrb[28].mxu1 %v1552_v16  ;;  %v413_v15 = vld [vmem:[#allocation2 + $0x30] sm:$0xff] }
 0x144   : > { %v1287_v17 = vpop.f32.mrb[0].mxu0  ;;  %v1335_v18 = vpop.f32.mrb[0].mxu1 }
 0x145   : > { %v1288_v20 = vpop.f32.mrb[1].mxu0  ;;  %v1336_v22 = vpop.f32.mrb[1].mxu1 }
 0x146   : > { %v1289_v23 = vadd.f32 %v1288_v20, %v1287_v17  ;;  %v1337_v24 = vadd.f32 %v1336_v22, %v1335_v18  ;;  %v1290_v25 = vpop.f32.mrb[2].mxu0  ;;  %v1338_v26 = vpop.f32.mrb[2].mxu1  ;;  %v429_v17 = vld [vmem:[#allocation2 + $0xb0] sm:$0xff] }
 0x147   : > { %v1291_v28 = vpop.f32.mrb[3].mxu0  ;;  %v1339_v30 = vpop.f32.mrb[3].mxu1 }
 0x148   : > { %v920_v31 = vadd.f32 %v1289_v23, %v407_v19  ;;  %v936_v32 = vadd.f32 %v1337_v24, %v423_v21  ;;  %v1292_v33 = vadd.f32 %v1291_v28, %v1290_v25  ;;  %v1340_v34 = vadd.f32 %v1339_v30, %v1338_v26  ;;  %v414_v23 = vld [vmem:[#allocation2 + $0x38] sm:$0xff] }
 0x149   : > { %v430_v25 = vld [vmem:[#allocation2 + $0xb8] sm:$0xff] }
 0x14a   : > { %952 = vst [vmem:[#allocation2] sm:$0xff] %v920_v31  ;;  %968 = vst [vmem:[#allocation2 + $0x80] sm:$0xff] %v936_v32  ;;  %v921_v35 = vadd.f32 %v1292_v33, %v408_v27  ;;  %v937_v36 = vadd.f32 %v1340_v34, %v424_v29 }
 0x14c   : > { %953 = vst [vmem:[#allocation2 + $0x8] sm:$0xff] %v921_v35  ;;  %969 = vst [vmem:[#allocation2 + $0x88] sm:$0xff] %v937_v36  ;;  %v1293_v37 = vpop.f32.mrb[4].mxu0  ;;  %v1341_v38 = vpop.f32.mrb[4].mxu1  ;;  %v415_v35 = vld [vmem:[#allocation2 + $0x40] sm:$0xff] }
 0x14d   : > { %v1294_v40 = vpop.f32.mrb[5].mxu0  ;;  %v1342_v42 = vpop.f32.mrb[5].mxu1 }
 0x14e   : > { %v1295_v43 = vadd.f32 %v1294_v40, %v1293_v37  ;;  %v1343_v44 = vadd.f32 %v1342_v42, %v1341_v38  ;;  %v1296_v45 = vpop.f32.mrb[6].mxu0  ;;  %v1344_v46 = vpop.f32.mrb[6].mxu1  ;;  %v431_v37 = vld [vmem:[#allocation2 + $0xc0] sm:$0xff] }
 0x14f   : > { %v1297_v48 = vpop.f32.mrb[7].mxu0  ;;  %v1345_v50 = vpop.f32.mrb[7].mxu1 }
 0x150   : > { %v922_v51 = vadd.f32 %v1295_v43, %v409_v39  ;;  %v938_v52 = vadd.f32 %v1343_v44, %v425_v41  ;;  %v1298_v53 = vadd.f32 %v1297_v48, %v1296_v45  ;;  %v1346_v54 = vadd.f32 %v1345_v50, %v1344_v46  ;;  %v416_v43 = vld [vmem:[#allocation2 + $0x48] sm:$0xff] }
 0x151   : > { %v432_v45 = vld [vmem:[#allocation2 + $0xc8] sm:$0xff] }
 0x152   : > { %954 = vst [vmem:[#allocation2 + $0x10] sm:$0xff] %v922_v51  ;;  %970 = vst [vmem:[#allocation2 + $0x90] sm:$0xff] %v938_v52  ;;  %v923_v55 = vadd.f32 %v1298_v53, %v410_v47  ;;  %v939_v56 = vadd.f32 %v1346_v54, %v426_v49 }
 0x154   : > { %955 = vst [vmem:[#allocation2 + $0x18] sm:$0xff] %v923_v55  ;;  %971 = vst [vmem:[#allocation2 + $0x98] sm:$0xff] %v939_v56  ;;  %v1299_v57 = vpop.f32.mrb[8].mxu0  ;;  %v1347_v58 = vpop.f32.mrb[8].mxu1  ;;  %v417_v55 = vld [vmem:[#allocation2 + $0x50] sm:$0xff] }
 0x155   : > { %v1300_v60 = vpop.f32.mrb[9].mxu0  ;;  %v1348_v62 = vpop.f32.mrb[9].mxu1 }
 0x156   : > { %v1301_v63 = vadd.f32 %v1300_v60, %v1299_v57  ;;  %v1349_v0 = vadd.f32 %v1348_v62, %v1347_v58  ;;  %v1302_v1 = vpop.f32.mrb[10].mxu0  ;;  %v1350_v2 = vpop.f32.mrb[10].mxu1  ;;  %v433_v57 = vld [vmem:[#allocation2 + $0xd0] sm:$0xff] }
 0x157   : > { %v1303_v4 = vpop.f32.mrb[11].mxu0  ;;  %v1351_v6 = vpop.f32.mrb[11].mxu1 }
 0x158   : > { %v924_v7 = vadd.f32 %v1301_v63, %v411_v59  ;;  %v940_v8 = vadd.f32 %v1349_v0, %v427_v61  ;;  %v1304_v9 = vadd.f32 %v1303_v4, %v1302_v1  ;;  %v1352_v10 = vadd.f32 %v1351_v6, %v1350_v2  ;;  %v418_v63 = vld [vmem:[#allocation2 + $0x58] sm:$0xff] }
 0x159   : > { %v434_v1 = vld [vmem:[#allocation2 + $0xd8] sm:$0xff] }
 0x15a   : > { %956 = vst [vmem:[#allocation2 + $0x20] sm:$0xff] %v924_v7  ;;  %972 = vst [vmem:[#allocation2 + $0xa0] sm:$0xff] %v940_v8  ;;  %v925_v11 = vadd.f32 %v1304_v9, %v412_v3  ;;  %v941_v12 = vadd.f32 %v1352_v10, %v428_v5 }
 0x15c   : > { %957 = vst [vmem:[#allocation2 + $0x28] sm:$0xff] %v925_v11  ;;  %973 = vst [vmem:[#allocation2 + $0xa8] sm:$0xff] %v941_v12  ;;  %v1305_v13 = vpop.f32.mrb[12].mxu0  ;;  %v1353_v14 = vpop.f32.mrb[12].mxu1  ;;  %v419_v11 = vld [vmem:[#allocation2 + $0x60] sm:$0xff] }
 0x15d   : > { %v1306_v16 = vpop.f32.mrb[13].mxu0  ;;  %v1354_v18 = vpop.f32.mrb[13].mxu1 }
 0x15e   : > { %v1307_v19 = vadd.f32 %v1306_v16, %v1305_v13  ;;  %v1355_v20 = vadd.f32 %v1354_v18, %v1353_v14  ;;  %v1308_v21 = vpop.f32.mrb[14].mxu0  ;;  %v1356_v22 = vpop.f32.mrb[14].mxu1  ;;  %v435_v13 = vld [vmem:[#allocation2 + $0xe0] sm:$0xff] }
 0x15f   : > { %v1309_v24 = vpop.f32.mrb[15].mxu0  ;;  %v1357_v26 = vpop.f32.mrb[15].mxu1 }
 0x160   : > { %v926_v27 = vadd.f32 %v1307_v19, %v413_v15  ;;  %v942_v28 = vadd.f32 %v1355_v20, %v429_v17  ;;  %v1310_v29 = vadd.f32 %v1309_v24, %v1308_v21  ;;  %v1358_v30 = vadd.f32 %v1357_v26, %v1356_v22  ;;  %v420_v19 = vld [vmem:[#allocation2 + $0x68] sm:$0xff] }
 0x161   : > { %v436_v21 = vld [vmem:[#allocation2 + $0xe8] sm:$0xff] }
 0x162   : > { %958 = vst [vmem:[#allocation2 + $0x30] sm:$0xff] %v926_v27  ;;  %974 = vst [vmem:[#allocation2 + $0xb0] sm:$0xff] %v942_v28  ;;  %v927_v31 = vadd.f32 %v1310_v29, %v414_v23  ;;  %v943_v32 = vadd.f32 %v1358_v30, %v430_v25 }
 0x164   : > { %959 = vst [vmem:[#allocation2 + $0x38] sm:$0xff] %v927_v31  ;;  %975 = vst [vmem:[#allocation2 + $0xb8] sm:$0xff] %v943_v32  ;;  %v1311_v33 = vpop.f32.mrb[16].mxu0  ;;  %v1359_v34 = vpop.f32.mrb[16].mxu1  ;;  %v421_v31 = vld [vmem:[#allocation2 + $0x70] sm:$0xff] }
 0x165   : > { %v1312_v36 = vpop.f32.mrb[17].mxu0  ;;  %v1360_v38 = vpop.f32.mrb[17].mxu1 }
 0x166   : > { %v1313_v39 = vadd.f32 %v1312_v36, %v1311_v33  ;;  %v1361_v40 = vadd.f32 %v1360_v38, %v1359_v34  ;;  %v1314_v41 = vpop.f32.mrb[18].mxu0  ;;  %v1362_v42 = vpop.f32.mrb[18].mxu1  ;;  %v437_v33 = vld [vmem:[#allocation2 + $0xf0] sm:$0xff] }
 0x167   : > { %v1315_v44 = vpop.f32.mrb[19].mxu0  ;;  %v1363_v46 = vpop.f32.mrb[19].mxu1 }
 0x168   : > { %v928_v47 = vadd.f32 %v1313_v39, %v415_v35  ;;  %v944_v48 = vadd.f32 %v1361_v40, %v431_v37  ;;  %v1316_v49 = vadd.f32 %v1315_v44, %v1314_v41  ;;  %v1364_v50 = vadd.f32 %v1363_v46, %v1362_v42  ;;  %v422_v39 = vld [vmem:[#allocation2 + $0x78] sm:$0xff] }
 0x169   : > { %v438_v41 = vld [vmem:[#allocation2 + $0xf8] sm:$0xff] }
 0x16a   : > { %960 = vst [vmem:[#allocation2 + $0x40] sm:$0xff] %v928_v47  ;;  %976 = vst [vmem:[#allocation2 + $0xc0] sm:$0xff] %v944_v48  ;;  %v929_v51 = vadd.f32 %v1316_v49, %v416_v43  ;;  %v945_v52 = vadd.f32 %v1364_v50, %v432_v45  ;;  %v988_v49 = vld [vmem:[#allocation2] sm:$0xff] (!%p1262_p5) }
 0x16b   : > { %v1925_v50 = vld [vmem:[%s2062_s2] ss:$0 sm:$0xff] (!%p1262_p5) }
 0x16c   : > { %961 = vst [vmem:[#allocation2 + $0x48] sm:$0xff] %v929_v51  ;;  %977 = vst [vmem:[#allocation2 + $0xc8] sm:$0xff] %v945_v52  ;;  %v1317_v53 = vpop.f32.mrb[20].mxu0  ;;  %v1365_v54 = vpop.f32.mrb[20].mxu1  ;;  %v989_v51 = vld [vmem:[#allocation2 + $0x8] sm:$0xff] (!%p1262_p5)  ;;  %v1027_v52 = vadd.f32 (!%p1262_p5), %v1925_v50, %v988_v49 }
 0x16d   : > { %v1318_v56 = vpop.f32.mrb[21].mxu0  ;;  %v1366_v58 = vpop.f32.mrb[21].mxu1 }
 0x16e   : > { %v1319_v59 = vadd.f32 %v1318_v56, %v1317_v53  ;;  %v1367_v60 = vadd.f32 %v1366_v58, %v1365_v54  ;;  %v1320_v61 = vpop.f32.mrb[22].mxu0  ;;  %v1368_v62 = vpop.f32.mrb[22].mxu1  ;;  %v1028_v53 = vadd.f32 (!%p1262_p5), %v1925_v50, %v989_v51  ;;  %v990_v54 = vld [vmem:[#allocation2 + $0x10] sm:$0xff] (!%p1262_p5)  ;;  %v992_v56 = vld [vmem:[#allocation2 + $0x20] sm:$0xff] (!%p1262_p5)  ;;  %1059 = vst [vmem:[%s1870_s28] sm:$0xff] (!%p1262_p5), %v1027_v52 }
 0x16f   : > { %v1321_v0 = vpop.f32.mrb[23].mxu0  ;;  %v1369_v2 = vpop.f32.mrb[23].mxu1 }
 0x170   : > { %v930_v3 = vadd.f32 %v1319_v59, %v417_v55  ;;  %v946_v4 = vadd.f32 %v1367_v60, %v433_v57  ;;  %v1322_v5 = vadd.f32 %v1321_v0, %v1320_v61  ;;  %v1370_v6 = vadd.f32 %v1369_v2, %v1368_v62  ;;  %v991_v55 = vld [vmem:[#allocation2 + $0x18] sm:$0xff] (!%p1262_p5)  ;;  %v993_v60 = vld [vmem:[#allocation2 + $0x28] sm:$0xff] (!%p1262_p5)  ;;  %v994_v61 = vld [vmem:[#allocation2 + $0x30] sm:$0xff] (!%p1262_p5)  ;;  %1060 = vst [vmem:[%s1870_s28 + $0x8] sm:$0xff] (!%p1262_p5), %v1028_v53 }
 0x171   : > { %v1029_v57 = vadd.f32 (!%p1262_p5), %v1925_v50, %v990_v54  ;;  %v1030_v58 = vadd.f32 (!%p1262_p5), %v1925_v50, %v991_v55  ;;  %v1031_v59 = vadd.f32 (!%p1262_p5), %v1925_v50, %v992_v56  ;;  %v995_v62 = vld [vmem:[#allocation2 + $0x38] sm:$0xff] (!%p1262_p5)  ;;  %v1033_v0 = vadd.f32 (!%p1262_p5), %v1925_v50, %v994_v61  ;;  %v996_v2 = vld [vmem:[#allocation2 + $0x40] sm:$0xff] (!%p1262_p5) }
 0x172   : > { %962 = vst [vmem:[#allocation2 + $0x50] sm:$0xff] %v930_v3  ;;  %978 = vst [vmem:[#allocation2 + $0xd0] sm:$0xff] %v946_v4  ;;  %v931_v7 = vadd.f32 %v1322_v5, %v418_v63  ;;  %v947_v8 = vadd.f32 %v1370_v6, %v434_v1  ;;  %v1032_v63 = vadd.f32 (!%p1262_p5), %v1925_v50, %v993_v60 }
 0x173   : > { %v1034_v1 = vadd.f32 (!%p1262_p5), %v1925_v50, %v995_v62  ;;  %v997_v3 = vld [vmem:[#allocation2 + $0x48] sm:$0xff] (!%p1262_p5)  ;;  %1061 = vst [vmem:[%s1870_s28 + $0x10] sm:$0xff] (!%p1262_p5), %v1029_v57  ;;  %1062 = vst [vmem:[%s1870_s28 + $0x18] sm:$0xff] (!%p1262_p5), %v1030_v58  ;;  %v1035_v5 = vadd.f32 (!%p1262_p5), %v1925_v50, %v996_v2 }
 0x174   : > { %963 = vst [vmem:[#allocation2 + $0x58] sm:$0xff] %v931_v7  ;;  %979 = vst [vmem:[#allocation2 + $0xd8] sm:$0xff] %v947_v8  ;;  %v1323_v9 = vpop.f32.mrb[24].mxu0  ;;  %v1371_v10 = vpop.f32.mrb[24].mxu1  ;;  %v1036_v6 = vadd.f32 (!%p1262_p5), %v1925_v50, %v997_v3 }
 0x175   : > { %v1324_v12 = vpop.f32.mrb[25].mxu0  ;;  %v1372_v14 = vpop.f32.mrb[25].mxu1  ;;  %1063 = vst [vmem:[%s1870_s28 + $0x20] sm:$0xff] (!%p1262_p5), %v1031_v59  ;;  %1064 = vst [vmem:[%s1870_s28 + $0x28] sm:$0xff] (!%p1262_p5), %v1032_v63 }
 0x176   : > { %v1325_v15 = vadd.f32 %v1324_v12, %v1323_v9  ;;  %v1373_v16 = vadd.f32 %v1372_v14, %v1371_v10  ;;  %v1326_v17 = vpop.f32.mrb[26].mxu0  ;;  %v1374_v18 = vpop.f32.mrb[26].mxu1  ;;  %1065 = vst [vmem:[%s1870_s28 + $0x30] sm:$0xff] (!%p1262_p5), %v1033_v0  ;;  %1066 = vst [vmem:[%s1870_s28 + $0x38] sm:$0xff] (!%p1262_p5), %v1034_v1 }
 0x177   : > { %v1327_v20 = vpop.f32.mrb[27].mxu0  ;;  %v1375_v22 = vpop.f32.mrb[27].mxu1  ;;  %1067 = vst [vmem:[%s1870_s28 + $0x40] sm:$0xff] (!%p1262_p5), %v1035_v5  ;;  %1068 = vst [vmem:[%s1870_s28 + $0x48] sm:$0xff] (!%p1262_p5), %v1036_v6 }
 0x178   : > { %v932_v23 = vadd.f32 %v1325_v15, %v419_v11  ;;  %v948_v24 = vadd.f32 %v1373_v16, %v435_v13  ;;  %v1328_v25 = vadd.f32 %v1327_v20, %v1326_v17  ;;  %v1376_v26 = vadd.f32 %v1375_v22, %v1374_v18  ;;  %v1004_v16 = vld [vmem:[#allocation2 + $0x80] sm:$0xff] (!%p1262_p5)  ;;  %v1005_v20 = vld [vmem:[#allocation2 + $0x88] sm:$0xff] (!%p1262_p5)  ;;  %v1007_v22 = vld [vmem:[#allocation2 + $0x98] sm:$0xff] (!%p1262_p5) }
 0x179   : > { %v998_v4 = vld [vmem:[#allocation2 + $0x50] sm:$0xff] (!%p1262_p5) }
 0x17a   : > { %964 = vst [vmem:[#allocation2 + $0x60] sm:$0xff] %v932_v23  ;;  %980 = vst [vmem:[#allocation2 + $0xe0] sm:$0xff] %v948_v24  ;;  %v933_v27 = vadd.f32 %v1328_v25, %v420_v19  ;;  %v949_v28 = vadd.f32 %v1376_v26, %v436_v21  ;;  %v1037_v7 = vadd.f32 (!%p1262_p5), %v1925_v50, %v998_v4  ;;  %v1006_v21 = vld [vmem:[#allocation2 + $0x90] sm:$0xff] (!%p1262_p5)  ;;  %v1008_v26 = vld [vmem:[#allocation2 + $0xa0] sm:$0xff] (!%p1262_p5) }
 0x17b   : > { %v999_v8 = vld [vmem:[#allocation2 + $0x58] sm:$0xff] (!%p1262_p5)  ;;  %v1043_v19 = vadd.f32 (!%p1262_p5), %v1925_v50, %v1004_v16  ;;  %v1044_v23 = vadd.f32 (!%p1262_p5), %v1925_v50, %v1005_v20  ;;  %v1045_v24 = vadd.f32 (!%p1262_p5), %v1925_v50, %v1006_v21  ;;  %v1046_v25 = vadd.f32 (!%p1262_p5), %v1925_v50, %v1007_v22 }
 0x17c   : > { %965 = vst [vmem:[#allocation2 + $0x68] sm:$0xff] %v933_v27  ;;  %981 = vst [vmem:[#allocation2 + $0xe8] sm:$0xff] %v949_v28  ;;  %v1329_v29 = vpop.f32.mrb[28].mxu0  ;;  %v1377_v30 = vpop.f32.mrb[28].mxu1  ;;  %v1038_v11 = vadd.f32 (!%p1262_p5), %v1925_v50, %v999_v8  ;;  %v1009_v27 = vld [vmem:[#allocation2 + $0xa8] sm:$0xff] (!%p1262_p5)  ;;  %v1010_v28 = vld [vmem:[#allocation2 + $0xb0] sm:$0xff] (!%p1262_p5) }
 0x17d   : > { %v1330_v32 = vpop.f32.mrb[29].mxu0  ;;  %v1378_v34 = vpop.f32.mrb[29].mxu1  ;;  %1069 = vst [vmem:[%s1870_s28 + $0x50] sm:$0xff] (!%p1262_p5), %v1037_v7  ;;  %1075 = vst [vmem:[%s1870_s28 + $0x80] sm:$0xff] (!%p1262_p5), %v1043_v19 }
 0x17e   : > { %v1331_v35 = vadd.f32 %v1330_v32, %v1329_v29  ;;  %v1379_v36 = vadd.f32 %v1378_v34, %v1377_v30  ;;  %v1332_v37 = vpop.f32.mrb[30].mxu0  ;;  %v1380_v38 = vpop.f32.mrb[30].mxu1  ;;  %987 = sbr.rel (%p1262_p5) target bundleno = 400 (0x190), region = 78  ;;  %1070 = vst [vmem:[%s1870_s28 + $0x58] sm:$0xff] (!%p1262_p5), %v1038_v11  ;;  %v1047_v29 = vadd.f32 (!%p1262_p5), %v1925_v50, %v1008_v26  ;;  %v1048_v30 = vadd.f32 (!%p1262_p5), %v1925_v50, %v1009_v27  ;;  %v1011_v32 = vld [vmem:[#allocation2 + $0xb8] sm:$0xff] (!%p1262_p5)  ;;  %v1013_v34 = vld [vmem:[#allocation2 + $0xc8] sm:$0xff] (!%p1262_p5) }
 0x17f   : > { %v1333_v40 = vpop.f32.mrb[31].mxu0  ;;  %v1381_v42 = vpop.f32.mrb[31].mxu1  ;;  %1076 = vst [vmem:[%s1870_s28 + $0x88] sm:$0xff] (!%p1262_p5), %v1044_v23  ;;  %1077 = vst [vmem:[%s1870_s28 + $0x90] sm:$0xff] (!%p1262_p5), %v1045_v24 }
 0x180   : > { %v934_v43 = vadd.f32 %v1331_v35, %v421_v31  ;;  %v950_v44 = vadd.f32 %v1379_v36, %v437_v33  ;;  %v1334_v45 = vadd.f32 %v1333_v40, %v1332_v37  ;;  %v1382_v46 = vadd.f32 %v1381_v42, %v1380_v38  ;;  %v1012_v33 = vld [vmem:[#allocation2 + $0xc0] sm:$0xff] (!%p1262_p5)  ;;  %1078 = vst [vmem:[%s1870_s28 + $0x98] sm:$0xff] (!%p1262_p5), %v1046_v25  ;;  %v1014_v38 = vld [vmem:[#allocation2 + $0xd0] sm:$0xff] (!%p1262_p5) }
 0x181   : > { %v1000_v9 = vld [vmem:[#allocation2 + $0x60] sm:$0xff] (!%p1262_p5)  ;;  %v1049_v31 = vadd.f32 (!%p1262_p5), %v1925_v50, %v1010_v28  ;;  %v1050_v35 = vadd.f32 (!%p1262_p5), %v1925_v50, %v1011_v32  ;;  %v1051_v36 = vadd.f32 (!%p1262_p5), %v1925_v50, %v1012_v33  ;;  %v1052_v37 = vadd.f32 (!%p1262_p5), %v1925_v50, %v1013_v34  ;;  %1079 = vst [vmem:[%s1870_s28 + $0xa0] sm:$0xff] (!%p1262_p5), %v1047_v29 }
 0x182   : > { %966 = vst [vmem:[#allocation2 + $0x70] sm:$0xff] %v934_v43  ;;  %982 = vst [vmem:[#allocation2 + $0xf0] sm:$0xff] %v950_v44  ;;  %v935_v47 = vadd.f32 %v1334_v45, %v422_v39  ;;  %v951_v48 = vadd.f32 %v1382_v46, %v438_v41  ;;  %v1039_v12 = vadd.f32 (!%p1262_p5), %v1925_v50, %v1000_v9  ;;  %v1015_v39 = vld [vmem:[#allocation2 + $0xd8] sm:$0xff] (!%p1262_p5)  ;;  %v1016_v40 = vld [vmem:[#allocation2 + $0xe0] sm:$0xff] (!%p1262_p5) }
 0x183   : > { %v1001_v10 = vld [vmem:[#allocation2 + $0x68] sm:$0xff] (!%p1262_p5)  ;;  %1080 = vst [vmem:[%s1870_s28 + $0xa8] sm:$0xff] (!%p1262_p5), %v1048_v30  ;;  %1081 = vst [vmem:[%s1870_s28 + $0xb0] sm:$0xff] (!%p1262_p5), %v1049_v31  ;;  %v1053_v41 = vadd.f32 (!%p1262_p5), %v1925_v50, %v1014_v38  ;;  %v1054_v42 = vadd.f32 (!%p1262_p5), %v1925_v50, %v1015_v39  ;;  %v1055_v43 = vadd.f32 (!%p1262_p5), %v1925_v50, %v1016_v40 }
 0x184   : > { %967 = vst [vmem:[#allocation2 + $0x78] sm:$0xff] %v935_v47  ;;  %983 = vst [vmem:[#allocation2 + $0xf8] sm:$0xff] %v951_v48  ;;  %v1040_v13 = vadd.f32 (!%p1262_p5), %v1925_v50, %v1001_v10  ;;  %v1017_v44 = vld [vmem:[#allocation2 + $0xe8] sm:$0xff] (!%p1262_p5) }
 0x185   : > { %1071 = vst [vmem:[%s1870_s28 + $0x60] sm:$0xff] %v1039_v12  ;;  %1082 = vst [vmem:[%s1870_s28 + $0xb8] sm:$0xff] %v1050_v35  ;;  %v1056_v47 = vadd.f32 %v1925_v50, %v1017_v44 }
 0x186   : > { %1072 = vst [vmem:[%s1870_s28 + $0x68] sm:$0xff] %v1040_v13  ;;  %1083 = vst [vmem:[%s1870_s28 + $0xc0] sm:$0xff] %v1051_v36 }
 0x187   : > { %1084 = vst [vmem:[%s1870_s28 + $0xc8] sm:$0xff] %v1052_v37  ;;  %1085 = vst [vmem:[%s1870_s28 + $0xd0] sm:$0xff] %v1053_v41 }
 0x188   : > { %1086 = vst [vmem:[%s1870_s28 + $0xd8] sm:$0xff] %v1054_v42  ;;  %1087 = vst [vmem:[%s1870_s28 + $0xe0] sm:$0xff] %v1055_v43 }
 0x189   : > { %v1002_v14 = vld [vmem:[#allocation2 + $0x70] sm:$0xff]  ;;  %1088 = vst [vmem:[%s1870_s28 + $0xe8] sm:$0xff] %v1056_v47 }
 0x18a   : > { %v1041_v17 = vadd.f32 %v1925_v50, %v1002_v14  ;;  %v1018_v45 = vld [vmem:[#allocation2 + $0xf0] sm:$0xff] }
 0x18b   : > { %v1003_v15 = vld [vmem:[#allocation2 + $0x78] sm:$0xff]  ;;  %v1057_v48 = vadd.f32 %v1925_v50, %v1018_v45 }
 0x18c   : > { %v1042_v18 = vadd.f32 %v1925_v50, %v1003_v15  ;;  %1073 = vst [vmem:[%s1870_s28 + $0x70] sm:$0xff] %v1041_v17  ;;  %v1019_v46 = vld [vmem:[#allocation2 + $0xf8] sm:$0xff] }
 0x18d   : > { %v1058_v49 = vadd.f32 %v1925_v50, %v1019_v46  ;;  %1089 = vst [vmem:[%s1870_s28 + $0xf0] sm:$0xff] %v1057_v48 }
 0x18e   : > { %1074 = vst [vmem:[%s1870_s28 + $0x78] sm:$0xff] %v1042_v18 }
 0x18f   : > { %1090 = vst [vmem:[%s1870_s28 + $0xf8] sm:$0xff] %v1058_v49 }
 0x190 PF: > { %s1270_s17 = sshll.u32 %s1651_s18, 12  ;;  %s1105_s23 = sshll.u32 %s1870_s28, 4  ;;  %s1998_s23 = int_to_ptr.vmem [resolvable:$true] %s1105_s23 }
 0x191   : > { %s1995_s22 = scalar_lea.hbm %s2063_s3, %s1270_s17  ;;  %s2002_s27 = scalar_lea.sflag [#allocation5], %s358_s9 }
 0x192   : > { %s1553_s4 = scalar_lea.vmem %s1998_s23, 4096  ;;  %s1666_s18 = smov [#allocation4]  }
 0x193   : > { %p1554_p6 = scmp.ne.s32.totalorder %s1998_s23, %s1553_s4  ;;  %s1557_s29 = sshll.u32 %s1666_s18, 4  ;;  %s1558_s29 = int_to_ptr.vmem [resolvable:$false] %s1557_s29 }
 0x194   : > { %s1559_s26 = scalar_lea.vmem %s1558_s29, 8192  ;;  %p1560_p10 = scmp.lt.s32.totalorder %s1998_s23, %s1558_s29 }
 0x195   : > { %p1555_p8 = pnand %p1554_p6, %p1761_p7  ;;  %p1561_p11 = scmp.lt.s32.totalorder %s1559_s26, %s1553_s4 }
 0x197   : > { %p1556_p9 = pneg %p1555_p8  ;;  %p1562_p13 = por %p1561_p11, %p1560_p10 }
 0x199   : > { %p1563_p0 = pnand %p1562_p13, %p1556_p9 }
 0x19b   : > { %1566 = shalt.err (!%p1563_p0)
}
 0x19c   : > { %s1567_s9 = scalar_lea.hbm %s1995_s22, 4096  ;;  %s1571_s5 = scalar_lea.hbm %s2063_s3, 8192 }
 0x19d   : > { %p1568_p1 = scmp.ne.s32.totalorder %s1995_s22, %s1567_s9  ;;  %p1572_p4 = scmp.lt.u32.totalorder %s1995_s22, %s2063_s3 }
 0x19e   : > { %p1573_p5 = scmp.lt.u32.totalorder %s1571_s5, %s1567_s9  ;;  %p1575_p8 = scmp.lt.u32.totalorder %s1567_s9, %s1995_s22 }
 0x19f   : > { %p1569_p2 = pnand %p1568_p1, %p1761_p7 }
 0x1a0   : > { %p1574_p6 = por %p1573_p5, %p1572_p4 }
 0x1a1   : > { %p1570_p3 = pneg %p1569_p2 }
 0x1a2   : > { %p1576_p9 = por %p1575_p8, %p1574_p6 }
 0x1a4   : > { %p1577_p10 = pnand %p1576_p9, %p1570_p3 }
 0x1a6   : > { %1580 = shalt.err (!%p1577_p10)
}
 0x1a7   : > { %s1667_s11 = smov 128   ;;  %s1668_s4 = smov 8  }
 0x1a8   : > { %1399 = dma.vmem_to_hbm [thread:$0]  (%p1761_p7), %s1998_s23, 4096, %s1995_s22, %s2002_s27, %s1667_s11, %s1667_s11, %s1668_s4  }
 0x1a9 PF: > { %p1405_p11 = scmp.ge.s32.totalorder %s1663_s21, 2  ;;  %s1120_s18 = sand.u32 1, %s1627_s12  }
 0x1aa   : > { %s1121_s29 = scalar_lea.sflag [#allocation5], %s1120_s18 }
 0x1ab   : > { %p1402_p13 = pnand %p1405_p11, %p1769_p12 }
 0x1ad   : > { %1622 = dma.done.wait (!%p1402_p13), %s1121_s29, 4096  }
 0x1ae   : > { %1624 = vsyncadd (!%p1402_p13), %s1121_s29, 4294963200  ;;  %s16_s21 = sadd.s32 1, %s1663_s21   ;;  %s2067_s12 = smov %s1631_s13 }
 0x1af   : > { %p13_p0 = scmp.ge.s32.totalorder %s16_s21, 6   ;;  %s2068_s13 = smov %s1635_s14 }
 0x1b0   : > { %s2069_s14 = smov %s1774_s7  ;;  %s2070_s15 = smov %s1643_s16 }
 0x1b1   : > { %s2071_s16 = smov %s1777_s8  ;;  %s2072_s17 = smov %s1655_s19 }
 0x1b2   : > { %s2073_s18 = smov %s1659_s20  ;;  %s2074_s19 = smov %s2077_s24 }
 0x1b3   : > { %s2075_s20 = smov %s2081_s25  ;;  %15 = sbr.rel (!%p13_p0) target bundleno = 6 (0x6), region = 121 }
 0x1ba   :  { %1126 = vsyncpa [#allocation5], 1 }
 0x1bb   :  { %1128 = vsyncpa [#allocation5 + $0x1], 1 }

</bundles_post_ra>
